<compile_context>
chip_gen: v6e
topology: v6e:2x2x1
jax: 0.10.0
libtpu: 0.0.40
codegen_flags: <defaults>
</compile_context>

<pallas_src>
import numpy as np
import jax
import jax.numpy as jnp
from jax.experimental import pallas as pl
from jax.experimental.pallas import tpu as pltpu


LANE = 128        # TPU lane width
PATH_TILE = 512   # paths processed per grid step (review: feed the MXU rows)


def _round_up(x, m):
    return ((x + m - 1) // m) * m


# -----------------------------------------------------------------------------
# Pallas kernel: path-tiled accumulation only.
# -----------------------------------------------------------------------------
def mhgrn_accum_kernel(z0_ref, msk_ref, wt_ref, g_ref, out_ref):
    K = wt_ref.shape[0]

    @pl.when(pl.program_id(0) == 0)
    def _init():
        out_ref[...] = jnp.zeros_like(out_ref)

    # Per-path relation-matrix chain.  All relation blocks live at H-lane
    # stride inside one 128-lane group (R*H + 1 <= 128), so every hop is one
    # bf16 [TP,128]@[128,128] MXU matmul.  The per-path one-hot relation
    # selection for hops 1..K-1 is a streamed 0/1 lane mask.  Lane 127 carries
    # a constant 1 through the chain so the CRF denominator comes out of the
    # same aggregation matmul below.
    z = z0_ref[...]                                           # bf16 [TP, 128]
    for rank in range(K):
        zt = jnp.dot(z, wt_ref[rank],
                     preferred_element_type=jnp.float32)      # f32 [TP, 128]
        if rank < K - 1:
            zt = zt * msk_ref[rank].astype(jnp.float32)
        z = zt.astype(jnp.bfloat16)

    # Activation-weighted (hop-length, src-node) aggregation: exp(CRF logit)
    # is pre-folded into g host-side, so a single bf16 matmul accumulates the
    # numerator (lanes 0:H) and the denominator (lane 127).
    out_ref[...] += jnp.dot(g_ref[...], z,
                            preferred_element_type=jnp.float32)


# -----------------------------------------------------------------------------
# Host-side glue
# -----------------------------------------------------------------------------
def build_paths(edge_index, edge_type, num_nodes, num_hops):
    # TODO(synk): DFS path enumeration is data-dependent recursive control flow
    # with no Pallas equivalent; it runs host-side on the concrete graph.
    src_list = [[] for _ in range(num_nodes)]
    for e in range(edge_index.shape[1]):
        src_list[int(edge_index[0, e])].append(
            (int(edge_index[1, e]), int(edge_type[e])))

    paths = []  # (src_node, dst_node, padded_rel_types[K], k)

    def dfs(depth, cur, path, root):
        if path:
            rel_types = path[::2][::-1]
            k = len(rel_types)
            padded = tuple(rel_types) + (0,) * (num_hops - k)
            paths.append((root, path[-1], padded, k))
        if depth == 0:
            return
        for nxt, rel in src_list[cur]:
            dfs(depth - 1, nxt, path + (rel, nxt), root)

    for i in range(num_nodes):
        dfs(num_hops - 1, i, (), i)
    return paths


def mhgrn_forward_pallas(params, node_type, node_emb, edge_index, edge_type,
                         batch, lm_context, num_rels, num_hops, num_graphs,
                         path_tile=PATH_TILE):
    node_type = np.asarray(node_type)
    node_emb_np = np.asarray(node_emb, dtype=np.float32)
    edge_index = np.asarray(edge_index)
    edge_type = np.asarray(edge_type)
    batch_np = np.asarray(batch)
    lm_np = np.asarray(lm_context, dtype=np.float32)

    N, H = node_emb_np.shape
    L = lm_np.shape[1]
    K, R = num_hops, num_rels
    assert R * H + 1 <= LANE, (
        "packed relation-block layout needs num_rels*hid_dim + 1 <= 128; "
        "larger configs need the wide (R*128-lane) layout")

    Npad = _round_up(N, 8)            # sublane-aligned node count
    KN = K * Npad
    Km1 = max(K - 1, 1)

    # ---- path enumeration + vectorized index gathers ----
    paths = build_paths(edge_index, edge_type, N, K)
    P = len(paths)
    P_pad = max(path_tile, _round_up(max(P, 1), path_tile))
    num_tiles = P_pad // path_tile

    path_src = np.zeros((P_pad,), np.int64)
    path_dst = np.zeros((P_pad,), np.int64)
    path_rels = np.zeros((P_pad, K), np.int64)
    path_k = np.zeros((P_pad,), np.int64)
    if P:
        psrc, pdst, prels, pk = zip(*paths)
        path_src[:P] = psrc
        path_dst[:P] = pdst
        path_rels[:P] = prels
        path_k[:P] = pk

    Wp = np.asarray(params["W"], np.float32)
    Tp = np.asarray(params["T"], np.float32)
    w_rel = np.asarray(params["w_rel"], np.float32)
    b_rel = np.asarray(params["b_rel"], np.float32)
    w_src = np.asarray(params["w_src"], np.float32)
    b_src = np.asarray(params["b_src"], np.float32)
    w_dst = np.asarray(params["w_dst"], np.float32)
    b_dst = np.asarray(params["b_dst"], np.float32)
    Bb = np.asarray(params["Bb"], np.float32)
    bb = np.float32(params["bb"])
    Vw = np.asarray(params["Vw"], np.float32)
    Vb = np.asarray(params["Vb"], np.float32)

    hid = np.arange(H)

    # z0: destination embeddings placed into relation block rel[0], plus a
    # carried 1 in lane 127 (becomes the group denominator).
    z0 = np.zeros((P_pad, LANE), np.float32)
    if P:
        cols0 = path_rels[:P, 0][:, None] * H + hid[None, :]
        z0[np.arange(P)[:, None], cols0] = node_emb_np[path_dst[:P]]
        z0[:P, LANE - 1] = 1.0

    # 0/1 lane masks for hops 1..K-1 (block rel[rank], carry lane kept).
    msk = np.zeros((Km1, P_pad, LANE), np.float32)
    if P and K > 1:
        for rank in range(1, K):
            cols = path_rels[:P, rank][:, None] * H + hid[None, :]
            msk[rank - 1, np.arange(P)[:, None], cols] = 1.0
            msk[rank - 1, :P, LANE - 1] = 1.0

    # Packed, transposed relation matrices [K, 128, 128]; non-final hops
    # replicate their output into every relation block so the next hop's mask
    # can select; row/col 127 carries the denominator 1 through the chain.
    wstack = np.zeros((K, LANE, LANE), np.float32)
    for rank in range(K):
        for r in range(R):
            wt = Wp[rank, r].T
            if rank < K - 1:
                for r2 in range(R):
                    wstack[rank, r * H:(r + 1) * H, r2 * H:(r2 + 1) * H] = wt
            else:
                wstack[rank, r * H:(r + 1) * H, :H] = wt
        wstack[rank, LANE - 1, LANE - 1] = 1.0

    # CRF path activation folded into the group indicator, pre-tiled so every
    # streamed G block is contiguous in HBM.  (Unguarded exp matches the
    # PyTorch reference; bf16 on the activations is fine at ~1e-2 tolerances.)
    Ga = np.zeros((num_tiles, KN, path_tile), np.float32)
    if P:
        s = lm_np[batch_np[path_src[:P]]].astype(np.float64)          # [P, L]
        logit = (np.einsum('pl,pl->p', s, w_src[node_type[path_src[:P]]])
                 + b_src[node_type[path_src[:P]]]
                 + np.einsum('pl,pl->p', s, w_dst[node_type[path_dst[:P]]])
                 + b_dst[node_type[path_dst[:P]]]
                 + np.einsum('pl,pl->p', s, w_rel[path_rels[:P]].sum(axis=1))
                 + b_rel[path_rels[:P]].sum(axis=1))
        if K > 1:
            logit = logit + Tp[path_rels[:P, :-1], path_rels[:P, 1:]].sum(axis=1)
        act = np.exp(logit)
        rows = path_k[:P] * Npad + path_src[:P]
        pidx = np.arange(P)
        Ga[pidx // path_tile, rows, pidx % path_tile] = act

    bf16 = jnp.bfloat16
    inputs = [jnp.asarray(z0, bf16), jnp.asarray(msk, bf16),
              jnp.asarray(wstack, bf16), jnp.asarray(Ga, bf16)]

    TP = path_tile
    acc = pl.pallas_call(
        mhgrn_accum_kernel,
        out_shape=jax.ShapeDtypeStruct((KN, LANE), jnp.float32),
        grid=(num_tiles,),
        in_specs=[
            pl.BlockSpec((TP, LANE), lambda i: (i, 0)),                  # z0
            pl.BlockSpec((Km1, TP, LANE), lambda i: (0, i, 0)),          # masks
            pl.BlockSpec((K, LANE, LANE), lambda i: (0, 0, 0)),          # W stack
            pl.BlockSpec((pl.Squeezed(), KN, TP), lambda i: (i, 0, 0)),  # G_a
        ],
        out_specs=pl.BlockSpec((KN, LANE), lambda i: (0, 0)),
        compiler_params=pltpu.CompilerParams(
            dimension_semantics=("arbitrary",),      # reduction over path tiles
            vmem_limit_bytes=48 * 1024 * 1024),      # within v7x's 64 MiB budget
    )(*inputs)
    # Note: on v7x a second "parallel" grid axis sharding the KN accumulator
    # rows would use both TensorCores; kept 1-D here since single-TC chips
    # would just re-run the relation chain for each shard.

    # ---- epilogue in plain XLA (tiny O(N*H) work; keeps the kernel VMEM
    # footprint to streamed path tiles + one resident accumulator) ----
    accr = acc.reshape(K, Npad, LANE)
    denom = accr[:, :N, LANE - 1:LANE]                       # [K, N, 1]
    numer = accr[:, :N, :H]                                  # [K, N, H]
    has = denom > 0.0
    z1 = jnp.where(has, numer / jnp.where(has, denom, 1.0), 0.0)

    s_node = jnp.asarray(lm_np[batch_np])                    # [N, L]
    w = jnp.einsum('nh,knh->kn', s_node @ jnp.asarray(Bb), z1) + bb
    soft = jax.nn.softmax(w, axis=0)                         # [K, N]
    z2 = jnp.einsum('kn,knh->nh', soft, z1)                  # [N, H]

    h2 = (s_node @ jnp.asarray(Vw[:L]) + z2 @ jnp.asarray(Vw[L:])
          + jnp.asarray(Vb))                                 # [N, H]
    gmask = jnp.asarray(batch_np)[None, :] == jnp.arange(num_graphs)[:, None]
    out = jnp.max(jnp.where(gmask[:, :, None], h2[None], -jnp.inf), axis=1)
    return out


# -----------------------------------------------------------------------------
# Pure numpy reference (mirrors the PyTorch forward literally).
# -----------------------------------------------------------------------------
def mhgrn_reference(params, node_type, node_emb, edge_index, edge_type, batch,
                    lm_context, num_rels, num_hops, num_graphs):
    W = np.asarray(params["W"], np.float64)
    T = np.asarray(params["T"], np.float64)
    w_rel = np.asarray(params["w_rel"], np.float64)
    b_rel = np.asarray(params["b_rel"], np.float64)
    w_src = np.asarray(params["w_src"], np.float64)
    b_src = np.asarray(params["b_src"], np.float64)
    w_dst = np.asarray(params["w_dst"], np.float64)
    b_dst = np.asarray(params["b_dst"], np.float64)
    Bb = np.asarray(params["Bb"], np.float64)
    bb = float(params["bb"])
    Vw = np.asarray(params["Vw"], np.float64)
    Vb = np.asarray(params["Vb"], np.float64)
    node_emb = node_emb.astype(np.float64)
    lm_context = lm_context.astype(np.float64)
    N, H = node_emb.shape
    K = num_hops

    edges_for_dfs = [[(int(edge_index[1, e]), int(edge_type[e]))
                      for e in range(edge_index.shape[1]) if int(edge_index[0, e]) == src]
                     for src in range(N)]

    def dfs(depth, cur, path):
        if path:
            yield path
        if depth == 0:
            return
        for nxt, rel in edges_for_dfs[cur]:
            yield from dfs(depth - 1, nxt, path + (rel, nxt))

    z2 = np.zeros((N, H))
    for i in range(N):
        s = lm_context[batch[i]]
        zak = []
        for p in dfs(K - 1, i, ()):
            j = p[-1]
            rel_types = p[::2][::-1]
            padded = tuple(rel_types) + (0,) * (K - len(rel_types))
            z = node_emb[j]
            for rank, rt in enumerate(padded):
                z = W[rank, rt] @ z
            act = np.exp(s @ w_src[node_type[i]] + b_src[node_type[i]]
                         + s @ w_dst[node_type[j]] + b_dst[node_type[j]]
                         + sum(s @ w_rel[r] + b_rel[r] for r in padded)
                         + sum(T[r1, r2] for r1, r2 in zip(padded, padded[1:])))
            zak.append((z, act, len(rel_types)))
        if not zak:
            continue
        zs = np.stack([x[0] for x in zak], 0)
        a = np.array([x[1] for x in zak])
        k = np.array([x[2] for x in zak])
        z1 = np.zeros((K, H))
        for kk in range(K):
            m = k == kk
            if m.any():
                z1[kk] = (zs[m] * a[m][:, None]).sum(0) / a[m].sum()
        weights = np.array([s @ Bb @ z1[kk] + bb for kk in range(K)])
        e = np.exp(weights - weights.max())
        soft = e / e.sum()
        z2[i] = (soft[:, None] * z1).sum(0)
    h2 = np.concatenate([lm_context[batch], z2], axis=1) @ Vw + Vb
    out = np.zeros((num_graphs, H))
    for b in range(num_graphs):
        out[b] = h2[batch == b].max(0)
    return out


# -----------------------------------------------------------------------------
if __name__ == "__main__":
    L_DIM, H_DIM = 16, 32          # lm_dim, hid_dim
    R, K = 3, 3                    # num_rels, num_hops
    N, E, NG = 10, 20, 2           # nodes, edges, graphs

    key = jax.random.PRNGKey(0)
    keys = jax.random.split(key, 18)

    node_emb = jax.random.normal(keys[0], (N, H_DIM), jnp.float32)
    lm_context = jax.random.normal(keys[1], (NG, L_DIM), jnp.float32)
    node_type = jax.random.randint(keys[2], (N,), 0, 3)
    edge_src = jax.random.randint(keys[3], (E,), 0, N)
    edge_dst = jax.random.randint(keys[4], (E,), 0, N)
    edge_type = jax.random.randint(keys[5], (E,), 0, R)
    edge_index = jnp.stack([edge_src, edge_dst], axis=0)
    batch = jnp.array([0] * (N // 2) + [1] * (N - N // 2), jnp.int32)

    # Deterministic synthetic parameters (scaled for numerical sanity).
    params = {
        "W": 0.25 * jax.random.normal(keys[6], (K, R, H_DIM, H_DIM), jnp.float32),
        "T": 0.1 * jax.random.normal(keys[7], (R, R), jnp.float32),
        "w_rel": 0.1 * jax.random.normal(keys[8], (R, L_DIM), jnp.float32),
        "b_rel": 0.1 * jax.random.normal(keys[9], (R,), jnp.float32),
        "w_src": 0.1 * jax.random.normal(keys[10], (3, L_DIM), jnp.float32),
        "b_src": 0.1 * jax.random.normal(keys[11], (3,), jnp.float32),
        "w_dst": 0.1 * jax.random.normal(keys[12], (3, L_DIM), jnp.float32),
        "b_dst": 0.1 * jax.random.normal(keys[13], (3,), jnp.float32),
        "Bb": 0.05 * jax.random.normal(keys[14], (L_DIM, H_DIM), jnp.float32),
        "bb": 0.1,
        "Vw": 0.1 * jax.random.normal(keys[15], (L_DIM + H_DIM, H_DIM), jnp.float32),
        "Vb": 0.05 * jax.random.normal(keys[16], (H_DIM,), jnp.float32),
    }

    out = mhgrn_forward_pallas(params, node_type, node_emb, edge_index, edge_type,
                               batch, lm_context, R, K, NG)
    out = jax.block_until_ready(out)

    ref = mhgrn_reference(params, np.asarray(node_type), np.asarray(node_emb),
                          np.asarray(edge_index), np.asarray(edge_type),
                          np.asarray(batch), np.asarray(lm_context), R, K, NG)

    assert out.shape == (NG, H_DIM)
    assert np.allclose(np.asarray(out), ref, rtol=5e-2, atol=5e-2), (
        "max abs diff %g" % np.abs(np.asarray(out) - ref).max())
    print("KERNEL_OK")
</pallas_src>

<mosaic_0001>
module attributes {stable_mosaic.version = 11 : i64} {
  func.func @mhgrn_accum_kernel(%arg0: i32, %arg1: memref<512x128xbf16, #tpu.memory_space<vmem>>, %arg2: memref<2x512x128xbf16, #tpu.memory_space<vmem>>, %arg3: memref<3x128x128xbf16, #tpu.memory_space<vmem>>, %arg4: memref<1x48x512xbf16, #tpu.memory_space<vmem>>, %arg5: memref<48x128xf32, #tpu.memory_space<vmem>>) attributes {dimension_semantics = [#tpu.dimension_semantics<arbitrary>], iteration_bounds = array<i64: 1>, scalar_prefetch = 0 : i64, scratch_operands = 0 : i64, tpu.core_type = #tpu.core_type<tc>, window_params = [{transform_indices = @transform_0, window_bounds = array<i64: 512, 128>}, {transform_indices = @transform_1, window_bounds = array<i64: 2, 512, 128>}, {pipeline_mode = #tpu.pipeline_mode<synchronous>, transform_indices = @transform_2, window_bounds = array<i64: 3, 128, 128>}, {transform_indices = @transform_3, window_bounds = array<i64: 1, 48, 512>}, {pipeline_mode = #tpu.pipeline_mode<synchronous>, transform_indices = @transform_4, window_bounds = array<i64: 48, 128>}]} {
    %c0_i32 = arith.constant 0 : i32
    %0 = arith.cmpi eq, %arg0, %c0_i32 : i32
    %1 = arith.extui %0 : i1 to i32
    %c0_i32_0 = arith.constant 0 : i32
    %2 = arith.cmpi ne, %1, %c0_i32_0 : i32
    scf.if %2 {
      %cst_25 = arith.constant 0.000000e+00 : f32
      %30 = vector.broadcast %cst_25 : f32 to vector<48x128xf32>
      %c0_26 = arith.constant 0 : index
      %c0_27 = arith.constant 0 : index
      %31 = vector.load %arg5[%c0_26, %c0_27] : memref<48x128xf32, #tpu.memory_space<vmem>>, vector<48x128xf32>
      tpu.vector_store %arg5[%c0_26, %c0_27], %30 {strides = array<i32>} : memref<48x128xf32, #tpu.memory_space<vmem>>, vector<48x128xf32>,
    } else {
    }
    %c0 = arith.constant 0 : index
    %c0_1 = arith.constant 0 : index
    %3 = vector.load %arg1[%c0, %c0_1] : memref<512x128xbf16, #tpu.memory_space<vmem>>, vector<512x128xbf16>
    %c0_2 = arith.constant 0 : index
    %c0_3 = arith.constant 0 : index
    %c0_4 = arith.constant 0 : index
    %4 = vector.load %arg3[%c0_2, %c0_3, %c0_4] : memref<3x128x128xbf16, #tpu.memory_space<vmem>>, vector<1x128x128xbf16>
    %5 = vector.shape_cast %4 : vector<1x128x128xbf16> to vector<128x128xbf16>
    %cst = arith.constant dense<0.000000e+00> : vector<512x128xf32>
    %6 = tpu.matmul %3, %5, %cst {dimension_numbers = #tpu.dot_dimension_numbers<[1], [0], [0], [1], [0, 0, 1, 1], [], []>} : vector<512x128xbf16>, vector<128x128xbf16>, vector<512x128xf32> -> vector<512x128xf32>
    %c0_5 = arith.constant 0 : index
    %c0_6 = arith.constant 0 : index
    %c0_7 = arith.constant 0 : index
    %7 = vector.load %arg2[%c0_5, %c0_6, %c0_7] : memref<2x512x128xbf16, #tpu.memory_space<vmem>>, vector<1x512x128xbf16>
    %8 = vector.shape_cast %7 : vector<1x512x128xbf16> to vector<512x128xbf16>
    %9 = arith.extf %8 : vector<512x128xbf16> to vector<512x128xf32>
    %10 = arith.mulf %6, %9 : vector<512x128xf32>
    %11 = arith.truncf %10 : vector<512x128xf32> to vector<512x128xbf16>
    %c1 = arith.constant 1 : index
    %c0_8 = arith.constant 0 : index
    %c0_9 = arith.constant 0 : index
    %12 = vector.load %arg3[%c1, %c0_8, %c0_9] : memref<3x128x128xbf16, #tpu.memory_space<vmem>>, vector<1x128x128xbf16>
    %13 = vector.shape_cast %12 : vector<1x128x128xbf16> to vector<128x128xbf16>
    %cst_10 = arith.constant dense<0.000000e+00> : vector<512x128xf32>
    %14 = tpu.matmul %11, %13, %cst_10 {dimension_numbers = #tpu.dot_dimension_numbers<[1], [0], [0], [1], [0, 0, 1, 1], [], []>} : vector<512x128xbf16>, vector<128x128xbf16>, vector<512x128xf32> -> vector<512x128xf32>
    %c1_11 = arith.constant 1 : index
    %c0_12 = arith.constant 0 : index
    %c0_13 = arith.constant 0 : index
    %15 = vector.load %arg2[%c1_11, %c0_12, %c0_13] : memref<2x512x128xbf16, #tpu.memory_space<vmem>>, vector<1x512x128xbf16>
    %16 = vector.shape_cast %15 : vector<1x512x128xbf16> to vector<512x128xbf16>
    %17 = arith.extf %16 : vector<512x128xbf16> to vector<512x128xf32>
    %18 = arith.mulf %14, %17 : vector<512x128xf32>
    %19 = arith.truncf %18 : vector<512x128xf32> to vector<512x128xbf16>
    %c2 = arith.constant 2 : index
    %c0_14 = arith.constant 0 : index
    %c0_15 = arith.constant 0 : index
    %20 = vector.load %arg3[%c2, %c0_14, %c0_15] : memref<3x128x128xbf16, #tpu.memory_space<vmem>>, vector<1x128x128xbf16>
    %21 = vector.shape_cast %20 : vector<1x128x128xbf16> to vector<128x128xbf16>
    %cst_16 = arith.constant dense<0.000000e+00> : vector<512x128xf32>
    %22 = tpu.matmul %19, %21, %cst_16 {dimension_numbers = #tpu.dot_dimension_numbers<[1], [0], [0], [1], [0, 0, 1, 1], [], []>} : vector<512x128xbf16>, vector<128x128xbf16>, vector<512x128xf32> -> vector<512x128xf32>
    %23 = arith.truncf %22 : vector<512x128xf32> to vector<512x128xbf16>
    %c0_17 = arith.constant 0 : index
    %c0_18 = arith.constant 0 : index
    %24 = vector.load %arg5[%c0_17, %c0_18] : memref<48x128xf32, #tpu.memory_space<vmem>>, vector<48x128xf32>
    %c0_19 = arith.constant 0 : index
    %c0_20 = arith.constant 0 : index
    %c0_21 = arith.constant 0 : index
    %25 = vector.load %arg4[%c0_19, %c0_20, %c0_21] : memref<1x48x512xbf16, #tpu.memory_space<vmem>>, vector<1x48x512xbf16>
    %26 = vector.shape_cast %25 : vector<1x48x512xbf16> to vector<48x512xbf16>
    %cst_22 = arith.constant dense<0.000000e+00> : vector<48x128xf32>
    %27 = tpu.matmul %26, %23, %cst_22 {dimension_numbers = #tpu.dot_dimension_numbers<[1], [0], [0], [1], [0, 0, 1, 1], [], []>} : vector<48x512xbf16>, vector<512x128xbf16>, vector<48x128xf32> -> vector<48x128xf32>
    %28 = arith.addf %24, %27 : vector<48x128xf32>
    %c0_23 = arith.constant 0 : index
    %c0_24 = arith.constant 0 : index
    %29 = vector.load %arg5[%c0_23, %c0_24] : memref<48x128xf32, #tpu.memory_space<vmem>>, vector<48x128xf32>
    tpu.vector_store %arg5[%c0_23, %c0_24], %28 {strides = array<i32>} : memref<48x128xf32, #tpu.memory_space<vmem>>, vector<48x128xf32>,
    return
  }
  func.func @transform_0(%arg0: i32) -> (i32, i32) {
    %c0_i32 = arith.constant 0 : i32
    %c0_i32_0 = arith.constant 0 : i32
    return %arg0, %c0_i32 : i32, i32
  }
  func.func @transform_1(%arg0: i32) -> (i32, i32, i32) {
    %c0_i32 = arith.constant 0 : i32
    %c0_i32_0 = arith.constant 0 : i32
    %c0_i32_1 = arith.constant 0 : i32
    return %c0_i32, %arg0, %c0_i32_0 : i32, i32, i32
  }
  func.func @transform_2(%arg0: i32) -> (i32, i32, i32) {
    %c0_i32 = arith.constant 0 : i32
    %c0_i32_0 = arith.constant 0 : i32
    %c0_i32_1 = arith.constant 0 : i32
    %c0_i32_2 = arith.constant 0 : i32
    return %c0_i32, %c0_i32_0, %c0_i32_1 : i32, i32, i32
  }
  func.func @transform_3(%arg0: i32) -> (i32, i32, i32) {
    %c0_i32 = arith.constant 0 : i32
    %c0_i32_0 = arith.constant 0 : i32
    %c0_i32_1 = arith.constant 0 : i32
    return %arg0, %c0_i32, %c0_i32_0 : i32, i32, i32
  }
  func.func @transform_4(%arg0: i32) -> (i32, i32) {
    %c0_i32 = arith.constant 0 : i32
    %c0_i32_0 = arith.constant 0 : i32
    %c0_i32_1 = arith.constant 0 : i32
    return %c0_i32, %c0_i32_0 : i32, i32
  }
}

</mosaic_0001>

<bundles_post_ra>
// kernel: tpu_custom_call.1
= control target key start
LH: loop header
LB: loop body
LE: loop exit
PB: predicated region body
PF: predicated region fallthrough
CT: control target
= control target key end

     0   :  { %9 = vsyncpa [#allocation3], 0  ;;  %s3264_s0 = inlined_call_operand.hbm [shape: bf16[512,128], index: 0, kind: input, shape index: {}]   ;;  %s3265_s1 = inlined_call_operand.hbm [shape: bf16[2,512,128], index: 1, kind: input, shape index: {}]   ;;  %s3266_s2 = inlined_call_operand.hbm [shape: bf16[3,128,128], index: 2, kind: input, shape index: {}]   ;;  %s3267_s3 = inlined_call_operand.hbm [shape: bf16[1,48,512], index: 3, kind: input, shape index: {}]   ;;  %s3268_s4 = inlined_call_operand.hbm [shape: f32[48,128], index: 4, kind: output, shape index: {}]  }
   0x1   :  { %10 = vsyncpa [#allocation6], 0 }
   0x2   :  { %11 = vsyncpa [#allocation9], 0 }
   0x3   :  { %12 = vsyncpa [#allocation4], 0  ;;  %s3129_s15 = smov [#allocation5]   ;;  %s3130_s17 = smov [#allocation2]  }
   0x4   :  { %s30_s16 = sshll.u32 %s3129_s15, 4  ;;  %s18_s18 = sshll.u32 %s3130_s17, 4  ;;  %s31_s16 = int_to_ptr.vmem [resolvable:$true] %s30_s16  ;;  %s19_s18 = int_to_ptr.vmem [resolvable:$true] %s18_s18 }
   0x5   :  { %s3029_s19 = scalar_lea.vmem %s31_s16, 8192  ;;  %p3034_p1 = scmp.lt.s32.totalorder %s31_s16, %s31_s16 }
   0x6   :  { %p3030_p0 = scmp.ne.s32.totalorder %s31_s16, %s3029_s19  ;;  %p3035_p2 = scmp.lt.s32.totalorder %s3029_s19, %s3029_s19 }
   0x8   :  { %p3036_p3 = por %p3035_p2, %p3034_p1 }
   0xa   :  { %p3037_p4 = pnand %p3036_p3, %p3030_p0 }
   0xc   :  { %3040 = shalt.err (!%p3037_p4)
}
   0xd   :  { %s3131_s20 = smov 64   ;;  %s3132_s21 = smov 4  }
   0xe   :  { %36 = dma.hbm_to_vmem [thread:$0]  %s3265_s1, 8192, %s31_s16, [#allocation6], %s3131_s20, %s3131_s20, %s3132_s21  }
   0xf   :  { %s3049_s24 = scalar_lea.vmem %s19_s18, 4096  ;;  %p3054_p6 = scmp.lt.s32.totalorder %s19_s18, %s19_s18 }
  0x10   :  { %p3050_p5 = scmp.ne.s32.totalorder %s19_s18, %s3049_s24  ;;  %p3055_p7 = scmp.lt.s32.totalorder %s3049_s24, %s3049_s24 }
  0x12   :  { %p3056_p8 = por %p3055_p7, %p3054_p6 }
  0x14   :  { %p3057_p9 = pnand %p3056_p8, %p3050_p5 }
  0x16   :  { %3060 = shalt.err (!%p3057_p9)
}
  0x17   :  { %24 = dma.hbm_to_vmem [thread:$0]  %s3264_s0, 4096, %s19_s18, [#allocation3], %s3131_s20, %s3131_s20, %s3132_s21  }
  0x18   :  { %s3133_s27 = smov [#allocation7]   ;;  %s3134_s29 = smov [#allocation8]  }
  0x19   :  { %s42_s28 = sshll.u32 %s3133_s27, 4  ;;  %s54_s30 = sshll.u32 %s3134_s29, 4  ;;  %s43_s28 = int_to_ptr.vmem [resolvable:$true] %s42_s28  ;;  %s55_s30 = int_to_ptr.vmem [resolvable:$true] %s54_s30 }
  0x1a   :  { %s3069_s5 = scalar_lea.vmem %s43_s28, 3072  ;;  %p3074_p11 = scmp.lt.s32.totalorder %s43_s28, %s43_s28 }
  0x1b   :  { %p3070_p10 = scmp.ne.s32.totalorder %s43_s28, %s3069_s5  ;;  %p3075_p12 = scmp.lt.s32.totalorder %s3069_s5, %s3069_s5 }
  0x1d   :  { %p3076_p13 = por %p3075_p12, %p3074_p11 }
  0x1f   :  { %p3077_p0 = pnand %p3076_p13, %p3070_p10 }
  0x21   :  { %3080 = shalt.err (!%p3077_p0)
}
  0x22   :  { %48 = dma.hbm_to_vmem [thread:$0]  %s3266_s2, 3072, %s43_s28, [#allocation6], %s3131_s20, %s3131_s20, %s3132_s21  }
  0x23   :  { %s3089_s7 = scalar_lea.vmem %s55_s30, 1536  ;;  %p3094_p2 = scmp.lt.s32.totalorder %s55_s30, %s55_s30 }
  0x24   :  { %p3090_p1 = scmp.ne.s32.totalorder %s55_s30, %s3089_s7  ;;  %p3095_p3 = scmp.lt.s32.totalorder %s3089_s7, %s3089_s7 }
  0x26   :  { %p3096_p4 = por %p3095_p3, %p3094_p2 }
  0x28   :  { %p3097_p5 = pnand %p3096_p4, %p3090_p1 }
  0x2a   :  { %3100 = shalt.err (!%p3097_p5)
}
  0x2b   :  { %s3135_s0 = smov 256   ;;  %s3136_s8 = smov 16  }
  0x2c   :  { %60 = dma.hbm_to_vmem [thread:$0]  %s3267_s3, 1536, %s55_s30, [#allocation9], %s3135_s0, %s3135_s0, %s3136_s8  }
  0x2d   :  { %3121 = dma.done.wait [#allocation3], 4096  }
  0x2e   :  { %3122 = vsyncadd [#allocation3], 4294963200 }
  0x2f   :  { %3123 = dma.done.wait [#allocation6], 11264  }
  0x30   :  { %3124 = vsyncadd [#allocation6], 4294956032 }
  0x31   :  { %3125 = dma.done.wait [#allocation9], 1536  }
  0x32   :  { %3126 = vsyncadd [#allocation9], 4294965760  ;;  %v2947_v0 = vld [vmem:[#allocation7 + $0x38] sm:$0xff]   ;;  %v2948_v1 = vld [vmem:[#allocation7 + $0x30] sm:$0xff]   ;;  %s3137_s2 = smov [#allocation10]  }
  0x33   :  { %2679 = vmatprep.subr.bf16.mxu0 %v2947_v0  ;;  %2919 = vmatprep.subr.bf16.mxu1 %v2947_v0  ;;  %v2949_v2 = vld [vmem:[#allocation7 + $0x28] sm:$0xff]   ;;  %v2950_v3 = vld [vmem:[#allocation7 + $0x20] sm:$0xff]   ;;  %v2951_v5 = vld [vmem:[#allocation7 + $0x18] sm:$0xff]   ;;  %s2091_s3 = sshll.u32 %s3137_s2, 4  ;;  %s2092_s3 = int_to_ptr.vmem [resolvable:$true] %s2091_s3 }
  0x34   :  { %2680 = vmatpush3.bf16.msra.mxu0 %v2947_v0  ;;  %2927 = vmatpush3.bf16.msra.mxu1 %v2947_v0  ;;  %v2955_v4 = vld [vmem:[#allocation2] sm:$0xff]   ;;  %v2952_v6 = vld [vmem:[#allocation7 + $0x10] sm:$0xff]   ;;  %v2953_v7 = vld [vmem:[#allocation7 + $0x8] sm:$0xff]   ;;  %s3101_s11 = scalar_lea.vmem %s2092_s3, 768  ;;  %p3106_p7 = scmp.lt.s32.totalorder %s2092_s3, %s2092_s3 }
  0x35   :  { %2681 = vmatprep.subr.bf16.mxu0 %v2948_v1  ;;  %2920 = vmatprep.subr.bf16.mxu1 %v2948_v1  ;;  %v2954_v8 = vld [vmem:[#allocation7] sm:$0xff]   ;;  %v2956_v9 = vld [vmem:[#allocation2 + $0x8] sm:$0xff]   ;;  %v2957_v10 = vld [vmem:[#allocation2 + $0x10] sm:$0xff]   ;;  %p3102_p6 = scmp.ne.s32.totalorder %s2092_s3, %s3101_s11  ;;  %p3107_p8 = scmp.lt.s32.totalorder %s3101_s11, %s3101_s11 }
  0x36   :  { %2695 = vmatprep.mubr.bf16.mxu0 %v2955_v4  ;;  %v2979_v11 = vld [vmem:[#allocation2 + $0xc0] sm:$0xff]   ;;  %v2980_v12 = vld [vmem:[#allocation2 + $0xc8] sm:$0xff]   ;;  %v2981_v13 = vld [vmem:[#allocation2 + $0xd0] sm:$0xff]  }
  0x37   :  { %2743 = vmatprep.mubr.bf16.mxu1 %v2979_v11  ;;  %v2958_v14 = vld [vmem:[#allocation2 + $0x18] sm:$0xff]   ;;  %v2959_v15 = vld [vmem:[#allocation2 + $0x20] sm:$0xff]   ;;  %v2988_v19 = vld [vmem:[#allocation7 + $0x70] sm:$0xff]   ;;  %p3108_p9 = por %p3107_p8, %p3106_p7 }
  0x38   :  { %2682 = vmatpush3.bf16.msra.mxu0 %v2948_v1  ;;  %2928 = vmatpush3.bf16.msra.mxu1 %v2948_v1  ;;  %v2982_v16 = vld [vmem:[#allocation2 + $0xd8] sm:$0xff]   ;;  %v2983_v17 = vld [vmem:[#allocation2 + $0xe0] sm:$0xff]   ;;  %v2960_v20 = vld [vmem:[#allocation2 + $0x28] sm:$0xff]  }
  0x39   :  { %2683 = vmatprep.subr.bf16.mxu0 %v2949_v2  ;;  %2921 = vmatprep.subr.bf16.mxu1 %v2949_v2  ;;  %v2987_v18 = vld [vmem:[#allocation7 + $0x78] sm:$0xff]   ;;  %v2989_v21 = vld [vmem:[#allocation7 + $0x68] sm:$0xff]   ;;  %v2961_v22 = vld [vmem:[#allocation2 + $0x30] sm:$0xff]   ;;  %p3109_p10 = pnand %p3108_p9, %p3102_p6 }
  0x3a   :  { %v2984_v23 = vld [vmem:[#allocation2 + $0xe8] sm:$0xff]   ;;  %v2985_v24 = vld [vmem:[#allocation2 + $0xf0] sm:$0xff]   ;;  %v2990_v25 = vld [vmem:[#allocation7 + $0x60] sm:$0xff]  }
  0x3b   :  { %v2991_v26 = vld [vmem:[#allocation7 + $0x58] sm:$0xff]   ;;  %v2963_v28 = vld [vmem:[#allocation2 + $0x40] sm:$0xff]   ;;  %v2964_v30 = vld [vmem:[#allocation2 + $0x48] sm:$0xff]  }
  0x3c   :  { %2684 = vmatpush3.bf16.msra.mxu0 %v2949_v2  ;;  %2929 = vmatpush3.bf16.msra.mxu1 %v2949_v2  ;;  %v2962_v27 = vld [vmem:[#allocation2 + $0x38] sm:$0xff]   ;;  %v2965_v31 = vld [vmem:[#allocation2 + $0x50] sm:$0xff]   ;;  %v2967_v33 = vld [vmem:[#allocation2 + $0x60] sm:$0xff]  }
  0x3d   :  { %2685 = vmatprep.subr.bf16.mxu0 %v2950_v3  ;;  %2922 = vmatprep.subr.bf16.mxu1 %v2950_v3  ;;  %v2986_v29 = vld [vmem:[#allocation2 + $0xf8] sm:$0xff]   ;;  %v2968_v34 = vld [vmem:[#allocation2 + $0x68] sm:$0xff]   ;;  %v2969_v35 = vld [vmem:[#allocation2 + $0x70] sm:$0xff]  }
  0x3e   :  { %v2966_v32 = vld [vmem:[#allocation2 + $0x58] sm:$0xff]   ;;  %v2971_v37 = vld [vmem:[#allocation2 + $0x80] sm:$0xff]   ;;  %v2972_v38 = vld [vmem:[#allocation2 + $0x88] sm:$0xff]  }
  0x3f   :  { %v2970_v36 = vld [vmem:[#allocation2 + $0x78] sm:$0xff]   ;;  %v2973_v39 = vld [vmem:[#allocation2 + $0x90] sm:$0xff]   ;;  %v2993_v41 = vld [vmem:[#allocation7 + $0x48] sm:$0xff]  }
  0x40   :  { %2686 = vmatpush3.bf16.msra.mxu0 %v2950_v3  ;;  %2930 = vmatpush3.bf16.msra.mxu1 %v2950_v3  ;;  %v2992_v40 = vld [vmem:[#allocation7 + $0x50] sm:$0xff]   ;;  %v2974_v42 = vld [vmem:[#allocation2 + $0x98] sm:$0xff]   ;;  %v2975_v43 = vld [vmem:[#allocation2 + $0xa0] sm:$0xff]  }
  0x41   :  { %2687 = vmatprep.subr.bf16.mxu0 %v2951_v5  ;;  %2923 = vmatprep.subr.bf16.mxu1 %v2951_v5  ;;  %v2994_v44 = vld [vmem:[#allocation7 + $0x40] sm:$0xff]   ;;  %v2976_v45 = vld [vmem:[#allocation2 + $0xa8] sm:$0xff]   ;;  %v2977_v46 = vld [vmem:[#allocation2 + $0xb0] sm:$0xff]  }
  0x42   :  { %v2978_v47 = vld [vmem:[#allocation2 + $0xb8] sm:$0xff]   ;;  %v2174_v49 = vld [vmem:[#allocation5] sm:$0xff]   ;;  %v2429_v50 = vld [vmem:[#allocation5 + $0x8] sm:$0xff]  }
  0x43   :  { %v2180_v52 = vunpack.c.h.bf16 %v2429_v50  ;;  %v2175_v53 = vunpack.c.l.bf16 %v2174_v49  ;;  %v2176_v54 = vunpack.c.h.bf16 %v2174_v49  ;;  %v2179_v55 = vunpack.c.l.bf16 %v2429_v50  ;;  %v2995_v57 = vld [vmem:[#allocation7 + $0xb8] sm:$0xff]   ;;  %v2996_v58 = vld [vmem:[#allocation7 + $0xb0] sm:$0xff]   ;;  %v2997_v2 = vld [vmem:[#allocation7 + $0xa8] sm:$0xff]  }
  0x44   :  { %2688 = vmatpush3.bf16.msra.mxu0 %v2951_v5  ;;  %2931 = vmatpush3.bf16.msra.mxu1 %v2951_v5  ;;  %v2430_v1 = vld [vmem:[#allocation5 + $0x10] sm:$0xff]   ;;  %v2431_v4 = vld [vmem:[#allocation5 + $0x18] sm:$0xff]  }
  0x45   :  { %2689 = vmatprep.subr.bf16.mxu0 %v2952_v6  ;;  %2924 = vmatprep.subr.bf16.mxu1 %v2952_v6 }
  0x48   :  { %2690 = vmatpush3.bf16.msra.mxu0 %v2952_v6  ;;  %2932 = vmatpush3.bf16.msra.mxu1 %v2952_v6 }
  0x49   :  { %2691 = vmatprep.subr.bf16.mxu0 %v2953_v7  ;;  %2925 = vmatprep.subr.bf16.mxu1 %v2953_v7 }
  0x4c   :  { %2692 = vmatpush3.bf16.msra.mxu0 %v2953_v7  ;;  %2933 = vmatpush3.bf16.msra.mxu1 %v2953_v7  ;;  %v2188_v7 = vunpack.c.h.bf16 %v2431_v4 }
  0x4d   :  { %2693 = vmatprep.subr.bf16.mxu0 %v2954_v8  ;;  %2926 = vmatprep.subr.bf16.mxu1 %v2954_v8 }
  0x50   :  { %2694 = vmatpush3.bf16.msra.mxu0 %v2954_v8  ;;  %2934 = vmatpush3.bf16.msra.mxu1 %v2954_v8  ;;  %v2183_v8 = vunpack.c.l.bf16 %v2430_v1 }
  0x51   :  { %2759 = vmatprep.subr.bf16.mxu1 %v2987_v18  ;;  %2839 = vmatprep.subr.bf16.mxu0 %v2995_v57 }
  0x53   :  { %2696 = vmatmul.mubr.bf16.vlgmr.msra.gmra.mxu0 %v2956_v9  ;;  %2744 = vmatmul.mubr.bf16.vlgmr.msra.gmra.mxu1 %v2980_v12  ;;  %v2184_v9 = vunpack.c.h.bf16 %v2430_v1  ;;  %v2998_v12 = vld [vmem:[#allocation7 + $0xa0] sm:$0xff]  }
  0x54   :  { %2699 = vmatprep.mubr.bf16.mxu0 %v2957_v10  ;;  %2747 = vmatprep.mubr.bf16.mxu1 %v2981_v13  ;;  %v2187_v10 = vunpack.c.l.bf16 %v2431_v4  ;;  %v2438_v4 = vld [vmem:[#allocation5 + $0x50] sm:$0xff]  }
  0x55   :  { %2760 = vmatpush3.bf16.msra.mxu1 %v2987_v18  ;;  %2840 = vmatpush3.bf16.msra.mxu0 %v2995_v57 }
  0x56   :  { %2761 = vmatprep.subr.bf16.mxu1 %v2988_v19  ;;  %2841 = vmatprep.subr.bf16.mxu0 %v2996_v58 }
  0x59   :  { %2762 = vmatpush3.bf16.msra.mxu1 %v2988_v19  ;;  %2842 = vmatpush3.bf16.msra.mxu0 %v2996_v58  ;;  %v2432_v19 = vld [vmem:[#allocation5 + $0x20] sm:$0xff]  }
  0x5a   :  { %2763 = vmatprep.subr.bf16.mxu1 %v2989_v21  ;;  %2843 = vmatprep.subr.bf16.mxu0 %v2997_v2 }
  0x5b   :  { %2700 = vmatmul.mubr.bf16.gmra.mxu0 %v2958_v14  ;;  %2748 = vmatmul.mubr.bf16.gmra.mxu1 %v2982_v16 }
  0x5c   :  { %2703 = vmatprep.mubr.bf16.mxu0 %v2959_v15  ;;  %2751 = vmatprep.mubr.bf16.mxu1 %v2983_v17 }
  0x5d   :  { %2764 = vmatpush3.bf16.msra.mxu1 %v2989_v21  ;;  %2844 = vmatpush3.bf16.msra.mxu0 %v2997_v2 }
  0x5e   :  { %2765 = vmatprep.subr.bf16.mxu1 %v2990_v25  ;;  %2845 = vmatprep.subr.bf16.mxu0 %v2998_v12 }
  0x61   :  { %2766 = vmatpush3.bf16.msra.mxu1 %v2990_v25  ;;  %2846 = vmatpush3.bf16.msra.mxu0 %v2998_v12 }
  0x62   :  { %2767 = vmatprep.subr.bf16.mxu1 %v2991_v26 }
  0x63   :  { %2704 = vmatmul.mubr.bf16.gmra.mxu0 %v2960_v20  ;;  %2752 = vmatmul.mubr.bf16.gmra.mxu1 %v2984_v23  ;;  %v2999_v20 = vld [vmem:[#allocation7 + $0x98] sm:$0xff]  }
  0x64   :  { %2707 = vmatprep.mubr.bf16.mxu0 %v2961_v22  ;;  %2755 = vmatprep.mubr.bf16.mxu1 %v2985_v24  ;;  %v2433_v22 = vld [vmem:[#allocation5 + $0x28] sm:$0xff]  }
  0x65   :  { %2768 = vmatpush3.bf16.msra.mxu1 %v2991_v26  ;;  %v2196_v25 = vunpack.c.h.bf16 %v2433_v22  ;;  %v2191_v26 = vunpack.c.l.bf16 %v2432_v19  ;;  %2847 = vmatprep.subr.bf16.mxu0 %v2999_v20 }
  0x66   :  { %2769 = vmatprep.subr.bf16.mxu1 %v2992_v40  ;;  %2848 = vmatpush3.bf16.msra.mxu0 %v2999_v20  ;;  %v2440_v20 = vld [vmem:[#allocation5 + $0x60] sm:$0xff]  }
  0x69   :  { %2770 = vmatpush3.bf16.msra.mxu1 %v2992_v40 }
  0x6a   :  { %2771 = vmatprep.subr.bf16.mxu1 %v2993_v41 }
  0x6b   :  { %2708 = vmatmul.mubr.bf16.gmra.mxu0 %v2962_v27  ;;  %2756 = vmatmul.mubr.bf16.gmra.mxu1 %v2986_v29  ;;  %v2192_v27 = vunpack.c.h.bf16 %v2432_v19 }
  0x6c   :  { %2711 = vmatprep.mubr.bf16.mxu0 %v2963_v28  ;;  %v2195_v28 = vunpack.c.l.bf16 %v2433_v22  ;;  %v2441_v22 = vld [vmem:[#allocation5 + $0x68] sm:$0xff]  }
  0x6d   :  { %2772 = vmatpush3.bf16.msra.mxu1 %v2993_v41 }
  0x6e   :  { %2773 = vmatprep.subr.bf16.mxu1 %v2994_v44 }
  0x71   :  { %2774 = vmatpush3.bf16.msra.mxu1 %v2994_v44 }
  0x73   :  { %2712 = vmatmul.mubr.bf16.gmra.mxu0 %v2964_v30 }
  0x74   :  { %2715 = vmatprep.mubr.bf16.mxu0 %v2965_v31 }
  0x7b   :  { %2716 = vmatmul.mubr.bf16.gmra.mxu0 %v2966_v32 }
  0x7c   :  { %2719 = vmatprep.mubr.bf16.mxu0 %v2967_v33 }
  0x83   :  { %2720 = vmatmul.mubr.bf16.gmra.mxu0 %v2968_v34 }
  0x84   :  { %2723 = vmatprep.mubr.bf16.mxu0 %v2969_v35 }
  0x8b   :  { %2724 = vmatmul.mubr.bf16.gmra.mxu0 %v2970_v36  ;;  %v2434_v36 = vld [vmem:[#allocation5 + $0x30] sm:$0xff]  }
  0x8c   :  { %2727 = vmatprep.mubr.bf16.mxu0 %v2971_v37 }
  0x93   :  { %2728 = vmatmul.mubr.bf16.gmra.mxu0 %v2972_v38  ;;  %v2435_v38 = vld [vmem:[#allocation5 + $0x38] sm:$0xff]  }
  0x94   :  { %2731 = vmatprep.mubr.bf16.mxu0 %v2973_v39  ;;  %v2204_v41 = vunpack.c.h.bf16 %v2435_v38  ;;  %v2203_v44 = vunpack.c.l.bf16 %v2435_v38 }
  0x9b   :  { %2732 = vmatmul.mubr.bf16.gmra.mxu0 %v2974_v42  ;;  %v2199_v42 = vunpack.c.l.bf16 %v2434_v36 }
  0x9c   :  { %2735 = vmatprep.mubr.bf16.mxu0 %v2975_v43  ;;  %v2200_v43 = vunpack.c.h.bf16 %v2434_v36 }
  0xa3   :  { %2736 = vmatmul.mubr.bf16.gmra.mxu0 %v2976_v45 }
  0xa4   :  { %2739 = vmatprep.mubr.bf16.mxu0 %v2977_v46 }
  0xab   :  { %2740 = vmatmul.mubr.bf16.gmra.mxu0 %v2978_v47 }
 0x113   :  { %v2697_v48 = vpop.f32.mrf.mxu0 }
 0x114   :  { %v823_v63 = vmul.f32 %v2697_v48, %v2179_v55 }
 0x115   :  { %v438_v51 = vpop.f32.mrf.mxu0 }
 0x116   :  { %v821_v61 = vmul.f32 %v2175_v53, %v438_v51 }
 0x117   :  { %v2698_v56 = vpop.f32.mrf.mxu0 }
 0x118   :  { %v824_v59 = vmul.f32 %v2698_v56, %v2180_v52  ;;  %v2436_v52 = vld [vmem:[#allocation5 + $0x40] sm:$0xff]  }
 0x119   :  { %v441_v60 = vpop.f32.mrf.mxu0  ;;  %v2207_v58 = vunpack.c.l.bf16 %v2436_v52 }
 0x11a   :  { %v822_v62 = vmul.f32 %v2176_v54, %v441_v60  ;;  %v886_v5 = vpack.c.bf16 %v824_v59, %v823_v63  ;;  %v2437_v54 = vld [vmem:[#allocation5 + $0x48] sm:$0xff]   ;;  %v2208_v59 = vunpack.c.h.bf16 %v2436_v52 }
 0x11b   :  { %v2701_v0 = vpop.f32.mrf.mxu0  ;;  %v2212_v57 = vunpack.c.h.bf16 %v2437_v54  ;;  %v2211_v60 = vunpack.c.l.bf16 %v2437_v54 }
 0x11c   :  { %v885_v3 = vpack.c.bf16 %v822_v62, %v821_v61  ;;  %v827_v17 = vmul.f32 %v2701_v0, %v2187_v10  ;;  %v2215_v10 = vunpack.c.l.bf16 %v2438_v4 }
 0x11d   :  { %v454_v6 = vpop.f32.mrf.mxu0 }
 0x11e   :  { %2775 = vmatprep.mubr.bf16.mxu1 %v885_v3  ;;  %v825_v15 = vmul.f32 %v2183_v8, %v454_v6  ;;  %v2439_v6 = vld [vmem:[#allocation5 + $0x58] sm:$0xff]  }
 0x11f   :  { %v2702_v11 = vpop.f32.mrf.mxu0  ;;  %2776 = vmatmul.mubr.bf16.vlgmr.msra.gmra.mxu1 %v886_v5  ;;  %v2219_v12 = vunpack.c.l.bf16 %v2439_v6 }
 0x120   :  { %v828_v13 = vmul.f32 %v2702_v11, %v2188_v7  ;;  %v2216_v11 = vunpack.c.h.bf16 %v2438_v4 }
 0x121   :  { %v457_v14 = vpop.f32.mrf.mxu0 }
 0x122   :  { %v826_v16 = vmul.f32 %v2184_v9, %v457_v14  ;;  %v888_v23 = vpack.c.bf16 %v828_v13, %v827_v17  ;;  %v2220_v9 = vunpack.c.h.bf16 %v2439_v6 }
 0x123   :  { %v2705_v18 = vpop.f32.mrf.mxu0 }
 0x124   :  { %v887_v21 = vpack.c.bf16 %v826_v16, %v825_v15  ;;  %v831_v34 = vmul.f32 %v2705_v18, %v2195_v28  ;;  %v2227_v28 = vunpack.c.l.bf16 %v2441_v22 }
 0x125   :  { %v470_v24 = vpop.f32.mrf.mxu0 }
 0x126   :  { %2779 = vmatprep.mubr.bf16.mxu1 %v887_v21  ;;  %v829_v32 = vmul.f32 %v2191_v26, %v470_v24  ;;  %v2223_v26 = vunpack.c.l.bf16 %v2440_v20 }
 0x127   :  { %v2706_v29 = vpop.f32.mrf.mxu0  ;;  %2780 = vmatmul.mubr.bf16.gmra.mxu1 %v888_v23 }
 0x128   :  { %v832_v30 = vmul.f32 %v2706_v29, %v2196_v25  ;;  %v2228_v25 = vunpack.c.h.bf16 %v2441_v22 }
 0x129   :  { %v473_v31 = vpop.f32.mrf.mxu0 }
 0x12a   :  { %v830_v33 = vmul.f32 %v2192_v27, %v473_v31  ;;  %v890_v39 = vpack.c.bf16 %v832_v30, %v831_v34  ;;  %v2224_v27 = vunpack.c.h.bf16 %v2440_v20 }
 0x12b   :  { %v2709_v35 = vpop.f32.mrf.mxu0 }
 0x12c   :  { %v889_v37 = vpack.c.bf16 %v830_v33, %v829_v32  ;;  %v835_v50 = vmul.f32 %v2709_v35, %v2203_v44  ;;  %v3177_v32 = vpop.f32.mrf.mxu1 }
 0x12d   :  { %v486_v40 = vpop.f32.mrf.mxu0 }
 0x12e   :  { %2783 = vmatprep.mubr.bf16.mxu1 %v889_v37  ;;  %v833_v48 = vmul.f32 %v2199_v42, %v486_v40  ;;  %v2442_v37 = vld [vmem:[#allocation5 + $0x70] sm:$0xff]  }
 0x12f   :  { %v2710_v45 = vpop.f32.mrf.mxu0  ;;  %2784 = vmatmul.mubr.bf16.gmra.mxu1 %v890_v39  ;;  %v2443_v39 = vld [vmem:[#allocation5 + $0x78] sm:$0xff]   ;;  %v2231_v44 = vunpack.c.l.bf16 %v2442_v37 }
 0x130   :  { %v836_v46 = vmul.f32 %v2710_v45, %v2204_v41  ;;  %v2236_v42 = vunpack.c.h.bf16 %v2443_v39  ;;  %v2232_v45 = vunpack.c.h.bf16 %v2442_v37  ;;  %v3002_v37 = vld [vmem:[#allocation7 + $0x80] sm:$0xff]  }
 0x131   :  { %v489_v47 = vpop.f32.mrf.mxu0 }
 0x132   :  { %v834_v49 = vmul.f32 %v2200_v43, %v489_v47  ;;  %v892_v55 = vpack.c.bf16 %v836_v46, %v835_v50  ;;  %v3179_v43 = vpop.f32.mrf.mxu1  ;;  %v2235_v46 = vunpack.c.l.bf16 %v2443_v39 }
 0x133   :  { %v2713_v51 = vpop.f32.mrf.mxu0 }
 0x134   :  { %v891_v53 = vpack.c.bf16 %v834_v49, %v833_v48  ;;  %v839_v2 = vmul.f32 %v2713_v51, %v2211_v60  ;;  %v3181_v50 = vpop.f32.mrf.mxu1 }
 0x135   :  { %v502_v56 = vpop.f32.mrf.mxu0 }
 0x136   :  { %2787 = vmatprep.mubr.bf16.mxu1 %v891_v53  ;;  %v837_v0 = vmul.f32 %v2207_v58, %v502_v56 }
 0x137   :  { %v2714_v61 = vpop.f32.mrf.mxu0  ;;  %2788 = vmatmul.mubr.bf16.gmra.mxu1 %v892_v55  ;;  %v2444_v55 = vld [vmem:[#allocation5 + $0x80] sm:$0xff]  }
 0x138   :  { %v840_v62 = vmul.f32 %v2714_v61, %v2212_v57  ;;  %v2445_v57 = vld [vmem:[#allocation5 + $0x88] sm:$0xff]   ;;  %v3183_v61 = vpop.f32.mrf.mxu1 }
 0x139   :  { %v505_v63 = vpop.f32.mrf.mxu0  ;;  %v2244_v60 = vunpack.c.h.bf16 %v2445_v57 }
 0x13a   :  { %v838_v1 = vmul.f32 %v2208_v59, %v505_v63  ;;  %v894_v7 = vpack.c.bf16 %v840_v62, %v839_v2  ;;  %v2239_v62 = vunpack.c.l.bf16 %v2444_v55  ;;  %v2240_v63 = vunpack.c.h.bf16 %v2444_v55  ;;  %v3185_v4 = vpop.f32.mrf.mxu1 }
 0x13b   :  { %v2717_v3 = vpop.f32.mrf.mxu0 }
 0x13c   :  { %v893_v5 = vpack.c.bf16 %v838_v1, %v837_v0  ;;  %v843_v18 = vmul.f32 %v2717_v3, %v2219_v12  ;;  %v2243_v0 = vunpack.c.l.bf16 %v2445_v57 }
 0x13d   :  { %v518_v8 = vpop.f32.mrf.mxu0 }
 0x13e   :  { %2791 = vmatprep.mubr.bf16.mxu1 %v893_v5  ;;  %v841_v16 = vmul.f32 %v2215_v10, %v518_v8 }
 0x13f   :  { %v2718_v13 = vpop.f32.mrf.mxu0  ;;  %2792 = vmatmul.mubr.bf16.gmra.mxu1 %v894_v7 }
 0x140   :  { %v844_v14 = vmul.f32 %v2718_v13, %v2220_v9  ;;  %v2446_v9 = vld [vmem:[#allocation5 + $0x90] sm:$0xff]  }
 0x141   :  { %v521_v15 = vpop.f32.mrf.mxu0 }
 0x142   :  { %v842_v17 = vmul.f32 %v2216_v11, %v521_v15  ;;  %v896_v23 = vpack.c.bf16 %v844_v14, %v843_v18  ;;  %v2447_v11 = vld [vmem:[#allocation5 + $0x98] sm:$0xff]   ;;  %v3187_v15 = vpop.f32.mrf.mxu1  ;;  %v2248_v18 = vunpack.c.h.bf16 %v2446_v9 }
 0x143   :  { %v2721_v19 = vpop.f32.mrf.mxu0  ;;  %v2252_v14 = vunpack.c.h.bf16 %v2447_v11 }
 0x144   :  { %v895_v21 = vpack.c.bf16 %v842_v17, %v841_v16  ;;  %v847_v35 = vmul.f32 %v2721_v19, %v2227_v28  ;;  %v3000_v16 = vld [vmem:[#allocation7 + $0x90] sm:$0xff]   ;;  %v2247_v17 = vunpack.c.l.bf16 %v2446_v9  ;;  %v2251_v19 = vunpack.c.l.bf16 %v2447_v11  ;;  %v2453_v11 = vld [vmem:[#allocation5 + $0xc8] sm:$0xff]  }
 0x145   :  { %v534_v24 = vpop.f32.mrf.mxu0  ;;  %2849 = vmatprep.subr.bf16.mxu0 %v3000_v16 }
 0x146   :  { %2795 = vmatprep.mubr.bf16.mxu1 %v895_v21  ;;  %v845_v33 = vmul.f32 %v2223_v26, %v534_v24  ;;  %2850 = vmatpush3.bf16.msra.mxu0 %v3000_v16  ;;  %v3001_v24 = vld [vmem:[#allocation7 + $0x88] sm:$0xff]  }
 0x147   :  { %v2722_v29 = vpop.f32.mrf.mxu0  ;;  %2796 = vmatmul.mubr.bf16.gmra.mxu1 %v896_v23  ;;  %v3189_v23 = vpop.f32.mrf.mxu1  ;;  %2851 = vmatprep.subr.bf16.mxu0 %v3001_v24 }
 0x148   :  { %v848_v30 = vmul.f32 %v2722_v29, %v2228_v25  ;;  %v2448_v29 = vld [vmem:[#allocation5 + $0xa0] sm:$0xff]  }
 0x149   :  { %v537_v31 = vpop.f32.mrf.mxu0  ;;  %v2256_v39 = vunpack.c.h.bf16 %v2448_v29 }
 0x14a   :  { %v846_v34 = vmul.f32 %v2224_v27, %v537_v31  ;;  %v898_v40 = vpack.c.bf16 %v848_v30, %v847_v35  ;;  %v2449_v31 = vld [vmem:[#allocation5 + $0xa8] sm:$0xff]   ;;  %2852 = vmatpush3.bf16.msra.mxu0 %v3001_v24 }
 0x14b   :  { %v2725_v36 = vpop.f32.mrf.mxu0  ;;  %v2260_v35 = vunpack.c.h.bf16 %v2449_v31  ;;  %2853 = vmatprep.subr.bf16.mxu0 %v3002_v37 }
 0x14c   :  { %v897_v38 = vpack.c.bf16 %v846_v34, %v845_v33  ;;  %v851_v53 = vmul.f32 %v2725_v36, %v2235_v46  ;;  %v649_v36 = vpop.f32.mrf.mxu1 }
 0x14d   :  { %v550_v41 = vpop.f32.mrf.mxu0 }
 0x14e   :  { %2799 = vmatprep.mubr.bf16.mxu1 %v897_v38  ;;  %v849_v51 = vmul.f32 %v2231_v44, %v550_v41  ;;  %v2255_v38 = vunpack.c.l.bf16 %v2448_v29  ;;  %2854 = vmatpush3.bf16.msra.mxu0 %v3002_v37  ;;  %v3191_v46 = vpop.f32.mrf.mxu1 }
 0x14f   :  { %v2726_v47 = vpop.f32.mrf.mxu0  ;;  %2800 = vmatmul.mubr.bf16.gmra.mxu1 %v898_v40  ;;  %v2259_v40 = vunpack.c.l.bf16 %v2449_v31 }
 0x150   :  { %v852_v48 = vmul.f32 %v2726_v47, %v2236_v42 }
 0x151   :  { %v553_v49 = vpop.f32.mrf.mxu0 }
 0x152   :  { %v850_v52 = vmul.f32 %v2232_v45, %v553_v49  ;;  %v900_v58 = vpack.c.bf16 %v852_v48, %v851_v53  ;;  %v2452_v45 = vld [vmem:[#allocation5 + $0xc0] sm:$0xff]  }
 0x153   :  { %v2729_v54 = vpop.f32.mrf.mxu0  ;;  %v2271_v55 = vunpack.c.l.bf16 %v2452_v45 }
 0x154   :  { %v899_v56 = vpack.c.bf16 %v850_v52, %v849_v51  ;;  %v855_v7 = vmul.f32 %v2729_v54, %v2243_v0  ;;  %v2450_v52 = vld [vmem:[#allocation5 + $0xb0] sm:$0xff]   ;;  %v2451_v54 = vld [vmem:[#allocation5 + $0xb8] sm:$0xff]  }
 0x155   :  { %v566_v59 = vpop.f32.mrf.mxu0  ;;  %v2267_v0 = vunpack.c.l.bf16 %v2451_v54 }
 0x156   :  { %2803 = vmatprep.mubr.bf16.mxu1 %v899_v56  ;;  %v853_v5 = vmul.f32 %v2239_v62, %v566_v59  ;;  %v2272_v56 = vunpack.c.h.bf16 %v2452_v45  ;;  %v2268_v59 = vunpack.c.h.bf16 %v2451_v54  ;;  %v2263_v62 = vunpack.c.l.bf16 %v2450_v52 }
 0x157   :  { %v2730_v1 = vpop.f32.mrf.mxu0  ;;  %2804 = vmatmul.mubr.bf16.gmra.mxu1 %v900_v58 }
 0x158   :  { %v856_v2 = vmul.f32 %v2730_v1, %v2244_v60  ;;  %v662_v60 = vpop.f32.mrf.mxu1 }
 0x159   :  { %v569_v3 = vpop.f32.mrf.mxu0 }
 0x15a   :  { %v854_v6 = vmul.f32 %v2240_v63, %v569_v3  ;;  %v902_v12 = vpack.c.bf16 %v856_v2, %v855_v7  ;;  %v2264_v63 = vunpack.c.h.bf16 %v2450_v52  ;;  %v869_v2 = vmul.f32 %v2271_v55, %v3179_v43  ;;  %v2454_v7 = vld [vmem:[#allocation5 + $0xd0] sm:$0xff]  }
 0x15b   :  { %v2733_v8 = vpop.f32.mrf.mxu0  ;;  %v870_v3 = vmul.f32 %v2272_v56, %v3183_v61  ;;  %v2279_v16 = vunpack.c.l.bf16 %v2454_v7 }
 0x15c   :  { %v901_v10 = vpack.c.bf16 %v854_v6, %v853_v5  ;;  %v859_v27 = vmul.f32 %v2733_v8, %v2251_v19  ;;  %v2754_v8 = vpop.f32.mrf.mxu1  ;;  %v2275_v19 = vunpack.c.l.bf16 %v2453_v11 }
 0x15d   :  { %v582_v13 = vpop.f32.mrf.mxu0  ;;  %v873_v43 = vmul.f32 %v2279_v16, %v3187_v15 }
 0x15e   :  { %2807 = vmatprep.mubr.bf16.mxu1 %v901_v10  ;;  %v857_v25 = vmul.f32 %v2247_v17, %v582_v13  ;;  %v2280_v17 = vunpack.c.h.bf16 %v2454_v7 }
 0x15f   :  { %v2734_v20 = vpop.f32.mrf.mxu0  ;;  %2808 = vmatmul.mubr.bf16.gmra.mxu1 %v902_v12 }
 0x160   :  { %v860_v21 = vmul.f32 %v2734_v20, %v2252_v14  ;;  %v909_v14 = vpack.c.bf16 %v870_v3, %v869_v2  ;;  %v2276_v20 = vunpack.c.h.bf16 %v2453_v11  ;;  %v874_v61 = vmul.f32 %v2280_v17, %v649_v36 }
 0x161   :  { %v585_v22 = vpop.f32.mrf.mxu0 }
 0x162   :  { %v858_v26 = vmul.f32 %v2248_v18, %v585_v22  ;;  %v904_v33 = vpack.c.bf16 %v860_v21, %v859_v27  ;;  %v665_v21 = vpop.f32.mrf.mxu1  ;;  %v871_v22 = vmul.f32 %v3177_v32, %v2275_v19  ;;  %v872_v24 = vmul.f32 %v3181_v50, %v2276_v20  ;;  %v2455_v27 = vld [vmem:[#allocation5 + $0xd8] sm:$0xff]  }
 0x163   :  { %v2737_v28 = vpop.f32.mrf.mxu0 }
 0x164   :  { %v903_v30 = vpack.c.bf16 %v858_v26, %v857_v25  ;;  %v863_v49 = vmul.f32 %v2737_v28, %v2259_v40  ;;  %v2456_v25 = vld [vmem:[#allocation5 + $0xe0] sm:$0xff]   ;;  %v2757_v26 = vpop.f32.mrf.mxu1  ;;  %v911_v28 = vpack.c.bf16 %v874_v61, %v873_v43  ;;  %v910_v31 = vpack.c.bf16 %v872_v24, %v871_v22 }
 0x165   :  { %v598_v34 = vpop.f32.mrf.mxu0  ;;  %v2287_v29 = vunpack.c.l.bf16 %v2456_v25 }
 0x166   :  { %2811 = vmatprep.mubr.bf16.mxu1 %v903_v30  ;;  %v861_v47 = vmul.f32 %v2255_v38, %v598_v34  ;;  %v2288_v30 = vunpack.c.h.bf16 %v2456_v25  ;;  %v2284_v34 = vunpack.c.h.bf16 %v2455_v27  ;;  %v2458_v38 = vld [vmem:[#allocation5 + $0xf0] sm:$0xff]  }
 0x167   :  { %v2738_v41 = vpop.f32.mrf.mxu0  ;;  %2812 = vmatmul.mubr.bf16.gmra.mxu1 %v904_v33  ;;  %v2283_v33 = vunpack.c.l.bf16 %v2455_v27  ;;  %v877_v37 = vmul.f32 %v2287_v29, %v662_v60 }
 0x168   :  { %v864_v42 = vmul.f32 %v2738_v41, %v2260_v35  ;;  %v678_v35 = vpop.f32.mrf.mxu1  ;;  %v878_v15 = vmul.f32 %v2288_v30, %v665_v21  ;;  %v876_v32 = vmul.f32 %v3189_v23, %v2284_v34  ;;  %v2295_v41 = vunpack.c.l.bf16 %v2458_v38  ;;  %v2464_v30 = vld [vmem:[#allocation5 + $0x128] sm:$0xff]  }
 0x169   :  { %v601_v44 = vpop.f32.mrf.mxu0  ;;  %v875_v36 = vmul.f32 %v3185_v4, %v2283_v33  ;;  %v2459_v4 = vld [vmem:[#allocation5 + $0xf8] sm:$0xff]   ;;  %v2324_v34 = vunpack.c.h.bf16 %v2464_v30 }
 0x16a   :  { %v862_v48 = vmul.f32 %v2256_v39, %v601_v44  ;;  %v906_v57 = vpack.c.bf16 %v864_v42, %v863_v49  ;;  %v2758_v50 = vpop.f32.mrf.mxu1  ;;  %v2457_v39 = vld [vmem:[#allocation5 + $0xe8] sm:$0xff]   ;;  %v913_v40 = vpack.c.bf16 %v878_v15, %v877_v37  ;;  %v2296_v42 = vunpack.c.h.bf16 %v2458_v38 }
 0x16b   :  { %v2741_v51 = vpop.f32.mrf.mxu0  ;;  %v912_v44 = vpack.c.bf16 %v876_v32, %v875_v36  ;;  %v2291_v45 = vunpack.c.l.bf16 %v2457_v39  ;;  %v881_v49 = vmul.f32 %v2295_v41, %v678_v35  ;;  %v2299_v55 = vunpack.c.l.bf16 %v2459_v4 }
 0x16c   :  { %v905_v53 = vpack.c.bf16 %v862_v48, %v861_v47  ;;  %v867_v12 = vmul.f32 %v2741_v51, %v2267_v0  ;;  %v2292_v47 = vunpack.c.h.bf16 %v2457_v39  ;;  %v681_v48 = vpop.f32.mrf.mxu1  ;;  %v2300_v56 = vunpack.c.h.bf16 %v2459_v4 }
 0x16d   :  { %v614_v58 = vpop.f32.mrf.mxu0  ;;  %v882_v51 = vmul.f32 %v2296_v42, %v681_v48  ;;  %v879_v52 = vmul.f32 %v3191_v46, %v2291_v45  ;;  %v2323_v15 = vunpack.c.l.bf16 %v2464_v30  ;;  %v2465_v42 = vld [vmem:[#allocation5 + $0x130] sm:$0xff]   ;;  %v2466_v45 = vld [vmem:[#allocation5 + $0x138] sm:$0xff]   ;;  %v2472_v30 = vld [vmem:[#allocation5 + $0x168] sm:$0xff]  }
 0x16e   :  { %2815 = vmatprep.mubr.bf16.mxu1 %v905_v53  ;;  %v865_v9 = vmul.f32 %v2263_v62, %v614_v58  ;;  %v880_v53 = vmul.f32 %v2754_v8, %v2292_v47  ;;  %v884_v58 = vmul.f32 %v2758_v50, %v2300_v56  ;;  %v2302_v62 = vld [vmem:[#allocation5 + $0x100] sm:$0xff]  }
 0x16f   :  { %v2742_v1 = vpop.f32.mrf.mxu0  ;;  %2816 = vmatmul.mubr.bf16.gmra.mxu1 %v906_v57  ;;  %v915_v54 = vpack.c.bf16 %v882_v51, %v881_v49  ;;  %v883_v57 = vmul.f32 %v2757_v26, %v2299_v55  ;;  %v2303_v2 = vunpack.c.l.bf16 %v2302_v62  ;;  %v2304_v3 = vunpack.c.h.bf16 %v2302_v62  ;;  %v2468_v62 = vld [vmem:[#allocation5 + $0x148] sm:$0xff]  }
 0x170   :  { %v868_v5 = vmul.f32 %v2742_v1, %v2268_v59  ;;  %v914_v23 = vpack.c.bf16 %v880_v53, %v879_v52  ;;  %v2332_v49 = vunpack.c.h.bf16 %v2466_v45  ;;  %v2327_v51 = vunpack.c.l.bf16 %v2465_v42 }
 0x171   :  { %v617_v6 = vpop.f32.mrf.mxu0  ;;  %v916_v59 = vpack.c.bf16 %v884_v58, %v883_v57  ;;  %v2328_v52 = vunpack.c.h.bf16 %v2465_v42  ;;  %v2331_v53 = vunpack.c.l.bf16 %v2466_v45  ;;  %v2473_v42 = vld [vmem:[#allocation5 + $0x170] sm:$0xff]   ;;  %v2474_v45 = vld [vmem:[#allocation5 + $0x178] sm:$0xff]  }
 0x172   :  { %v866_v10 = vmul.f32 %v2264_v63, %v617_v6  ;;  %v908_v18 = vpack.c.bf16 %v868_v5, %v867_v12  ;;  %v2460_v63 = vld [vmem:[#allocation5 + $0x108] sm:$0xff]   ;;  %v2461_v12 = vld [vmem:[#allocation5 + $0x110] sm:$0xff]  }
 0x173   :  { %v2308_v1 = vunpack.c.h.bf16 %v2460_v63  ;;  %v2307_v46 = vunpack.c.l.bf16 %v2460_v63  ;;  %v2311_v19 = vunpack.c.l.bf16 %v2461_v12  ;;  %v2312_v20 = vunpack.c.h.bf16 %v2461_v12  ;;  %v2469_v12 = vld [vmem:[#allocation5 + $0x150] sm:$0xff]  }
 0x174   :  { %v907_v13 = vpack.c.bf16 %v866_v10, %v865_v9 }
 0x176   :  { %2819 = vmatprep.mubr.bf16.mxu1 %v907_v13 }
 0x177   :  { %2820 = vmatmul.mubr.bf16.gmra.mxu1 %v908_v18 }
 0x178   :  { %2823 = vmatprep.mubr.bf16.mxu1 %v909_v14  ;;  %v2462_v14 = vld [vmem:[#allocation5 + $0x118] sm:$0xff]  }
 0x179   :  { %v2316_v18 = vunpack.c.h.bf16 %v2462_v14  ;;  %v2315_v21 = vunpack.c.l.bf16 %v2462_v14  ;;  %v2470_v14 = vld [vmem:[#allocation5 + $0x158] sm:$0xff]  }
 0x17f   :  { %2824 = vmatmul.mubr.bf16.gmra.mxu1 %v910_v31 }
 0x180   :  { %2827 = vmatprep.mubr.bf16.mxu1 %v911_v28  ;;  %v2463_v28 = vld [vmem:[#allocation5 + $0x120] sm:$0xff]  }
 0x181   :  { %v2319_v35 = vunpack.c.l.bf16 %v2463_v28  ;;  %v2320_v37 = vunpack.c.h.bf16 %v2463_v28  ;;  %v2471_v28 = vld [vmem:[#allocation5 + $0x160] sm:$0xff]  }
 0x187   :  { %2828 = vmatmul.mubr.bf16.gmra.mxu1 %v912_v44 }
 0x188   :  { %2831 = vmatprep.mubr.bf16.mxu1 %v913_v40 }
 0x18f   :  { %2832 = vmatmul.mubr.bf16.gmra.mxu1 %v914_v23 }
 0x190   :  { %2835 = vmatprep.mubr.bf16.mxu1 %v915_v54 }
 0x197   :  { %2836 = vmatmul.mubr.bf16.gmra.mxu1 %v916_v59  ;;  %v2467_v59 = vld [vmem:[#allocation5 + $0x140] sm:$0xff]  }
 0x1df   :  { %v2777_v60 = vpop.f32.mrf.mxu1 }
 0x1e0   :  { %v1402_v10 = vmul.f32 %v2777_v60, %v2307_v46  ;;  %v2339_v46 = vunpack.c.l.bf16 %v2468_v62 }
 0x1e1   :  { %v1016_v0 = vpop.f32.mrf.mxu1 }
 0x1e2   :  { %v1400_v8 = vmul.f32 %v2303_v2, %v1016_v0  ;;  %v2335_v2 = vunpack.c.l.bf16 %v2467_v59 }
 0x1e3   :  { %v2778_v5 = vpop.f32.mrf.mxu1 }
 0x1e4   :  { %v1403_v6 = vmul.f32 %v2778_v5, %v2308_v1  ;;  %v2340_v1 = vunpack.c.h.bf16 %v2468_v62  ;;  %v2476_v62 = vld [vmem:[#allocation5 + $0x188] sm:$0xff]  }
 0x1e5   :  { %v1019_v7 = vpop.f32.mrf.mxu1 }
 0x1e6   :  { %v1401_v9 = vmul.f32 %v2304_v3, %v1019_v7  ;;  %v1465_v16 = vpack.c.bf16 %v1403_v6, %v1402_v10  ;;  %v2336_v3 = vunpack.c.h.bf16 %v2467_v59  ;;  %v2475_v59 = vld [vmem:[#allocation5 + $0x180] sm:$0xff]  }
 0x1e7   :  { %v2781_v11 = vpop.f32.mrf.mxu1 }
 0x1e8   :  { %v1464_v13 = vpack.c.bf16 %v1401_v9, %v1400_v8  ;;  %v1406_v26 = vmul.f32 %v2781_v11, %v2315_v21  ;;  %v2347_v21 = vunpack.c.l.bf16 %v2470_v14 }
 0x1e9   :  { %v1032_v17 = vpop.f32.mrf.mxu1 }
 0x1ea   :  { %2855 = vmatprep.mubr.bf16.mxu0 %v1464_v13  ;;  %v1404_v24 = vmul.f32 %v2311_v19, %v1032_v17  ;;  %v2343_v19 = vunpack.c.l.bf16 %v2469_v12 }
 0x1eb   :  { %v2782_v43 = vpop.f32.mrf.mxu1  ;;  %2856 = vmatmul.mubr.bf16.vlgmr.msra.gmra.mxu0 %v1465_v16 }
 0x1ec   :  { %v1407_v61 = vmul.f32 %v2782_v43, %v2316_v18  ;;  %v2348_v18 = vunpack.c.h.bf16 %v2470_v14  ;;  %v2478_v14 = vld [vmem:[#allocation5 + $0x198] sm:$0xff]  }
 0x1ed   :  { %v1035_v22 = vpop.f32.mrf.mxu1 }
 0x1ee   :  { %v1405_v25 = vmul.f32 %v2312_v20, %v1035_v22  ;;  %v1467_v31 = vpack.c.bf16 %v1407_v61, %v1406_v26  ;;  %v2344_v20 = vunpack.c.h.bf16 %v2469_v12  ;;  %v2477_v12 = vld [vmem:[#allocation5 + $0x190] sm:$0xff]  }
 0x1ef   :  { %v2785_v27 = vpop.f32.mrf.mxu1 }
 0x1f0   :  { %v1466_v29 = vpack.c.bf16 %v1405_v25, %v1404_v24  ;;  %v1410_v40 = vmul.f32 %v2785_v27, %v2323_v15  ;;  %v2355_v15 = vunpack.c.l.bf16 %v2472_v30 }
 0x1f1   :  { %v1048_v33 = vpop.f32.mrf.mxu1 }
 0x1f2   :  { %2859 = vmatprep.mubr.bf16.mxu0 %v1466_v29  ;;  %v1408_v50 = vmul.f32 %v2319_v35, %v1048_v33  ;;  %v2351_v35 = vunpack.c.l.bf16 %v2471_v28 }
 0x1f3   :  { %v2786_v36 = vpop.f32.mrf.mxu1  ;;  %2860 = vmatmul.mubr.bf16.gmra.mxu0 %v1467_v31 }
 0x1f4   :  { %v1411_v32 = vmul.f32 %v2786_v36, %v2324_v34  ;;  %v2356_v34 = vunpack.c.h.bf16 %v2472_v30  ;;  %v2480_v30 = vld [vmem:[#allocation5 + $0x1a8] sm:$0xff]  }
 0x1f5   :  { %v1051_v38 = vpop.f32.mrf.mxu1 }
 0x1f6   :  { %v1409_v39 = vmul.f32 %v2320_v37, %v1051_v38  ;;  %v1469_v47 = vpack.c.bf16 %v1411_v32, %v1410_v40  ;;  %v2352_v37 = vunpack.c.h.bf16 %v2471_v28  ;;  %v2479_v28 = vld [vmem:[#allocation5 + $0x1a0] sm:$0xff]  }
 0x1f7   :  { %v2789_v41 = vpop.f32.mrf.mxu1 }
 0x1f8   :  { %v1468_v44 = vpack.c.bf16 %v1409_v39, %v1408_v50  ;;  %v1414_v57 = vmul.f32 %v2789_v41, %v2331_v53  ;;  %v2363_v53 = vunpack.c.l.bf16 %v2474_v45 }
 0x1f9   :  { %v1064_v48 = vpop.f32.mrf.mxu1 }
 0x1fa   :  { %2863 = vmatprep.mubr.bf16.mxu0 %v1468_v44  ;;  %v1412_v55 = vmul.f32 %v2327_v51, %v1064_v48  ;;  %v2359_v51 = vunpack.c.l.bf16 %v2473_v42 }
 0x1fb   :  { %v2790_v4 = vpop.f32.mrf.mxu1  ;;  %2864 = vmatmul.mubr.bf16.gmra.mxu0 %v1469_v47 }
 0x1fc   :  { %v1415_v54 = vmul.f32 %v2790_v4, %v2332_v49  ;;  %v2364_v49 = vunpack.c.h.bf16 %v2474_v45  ;;  %v2482_v45 = vld [vmem:[#allocation5 + $0x1b8] sm:$0xff]  }
 0x1fd   :  { %v1067_v23 = vpop.f32.mrf.mxu1 }
 0x1fe   :  { %v1413_v56 = vmul.f32 %v2328_v52, %v1067_v23  ;;  %v1471_v63 = vpack.c.bf16 %v1415_v54, %v1414_v57  ;;  %v2360_v52 = vunpack.c.h.bf16 %v2473_v42  ;;  %v2481_v42 = vld [vmem:[#allocation5 + $0x1b0] sm:$0xff]  }
 0x1ff   :  { %v2793_v58 = vpop.f32.mrf.mxu1 }
 0x200   :  { %v1470_v60 = vpack.c.bf16 %v1413_v56, %v1412_v55  ;;  %v1418_v10 = vmul.f32 %v2793_v58, %v2339_v46  ;;  %v2371_v46 = vunpack.c.l.bf16 %v2476_v62 }
 0x201   :  { %v1080_v0 = vpop.f32.mrf.mxu1 }
 0x202   :  { %2867 = vmatprep.mubr.bf16.mxu0 %v1470_v60  ;;  %v1416_v8 = vmul.f32 %v2335_v2, %v1080_v0  ;;  %v2367_v2 = vunpack.c.l.bf16 %v2475_v59 }
 0x203   :  { %v2794_v5 = vpop.f32.mrf.mxu1  ;;  %2868 = vmatmul.mubr.bf16.gmra.mxu0 %v1471_v63 }
 0x204   :  { %v1419_v6 = vmul.f32 %v2794_v5, %v2340_v1  ;;  %v2372_v1 = vunpack.c.h.bf16 %v2476_v62  ;;  %v2484_v62 = vld [vmem:[#allocation5 + $0x1c8] sm:$0xff]  }
 0x205   :  { %v1083_v7 = vpop.f32.mrf.mxu1 }
 0x206   :  { %v1417_v9 = vmul.f32 %v2336_v3, %v1083_v7  ;;  %v1473_v16 = vpack.c.bf16 %v1419_v6, %v1418_v10  ;;  %v2368_v3 = vunpack.c.h.bf16 %v2475_v59  ;;  %v2483_v59 = vld [vmem:[#allocation5 + $0x1c0] sm:$0xff]  }
 0x207   :  { %v2797_v11 = vpop.f32.mrf.mxu1 }
 0x208   :  { %v1472_v13 = vpack.c.bf16 %v1417_v9, %v1416_v8  ;;  %v1422_v26 = vmul.f32 %v2797_v11, %v2347_v21  ;;  %v2379_v21 = vunpack.c.l.bf16 %v2478_v14 }
 0x209   :  { %v1096_v17 = vpop.f32.mrf.mxu1 }
 0x20a   :  { %2871 = vmatprep.mubr.bf16.mxu0 %v1472_v13  ;;  %v1420_v24 = vmul.f32 %v2343_v19, %v1096_v17  ;;  %v2375_v19 = vunpack.c.l.bf16 %v2477_v12 }
 0x20b   :  { %v2798_v43 = vpop.f32.mrf.mxu1  ;;  %2872 = vmatmul.mubr.bf16.gmra.mxu0 %v1473_v16 }
 0x20c   :  { %v1423_v61 = vmul.f32 %v2798_v43, %v2348_v18  ;;  %v2380_v18 = vunpack.c.h.bf16 %v2478_v14  ;;  %v2486_v14 = vld [vmem:[#allocation5 + $0x1d8] sm:$0xff]  }
 0x20d   :  { %v1099_v22 = vpop.f32.mrf.mxu1 }
 0x20e   :  { %v1421_v25 = vmul.f32 %v2344_v20, %v1099_v22  ;;  %v1475_v31 = vpack.c.bf16 %v1423_v61, %v1422_v26  ;;  %v2376_v20 = vunpack.c.h.bf16 %v2477_v12  ;;  %v2485_v12 = vld [vmem:[#allocation5 + $0x1d0] sm:$0xff]  }
 0x20f   :  { %v2801_v27 = vpop.f32.mrf.mxu1 }
 0x210   :  { %v1474_v29 = vpack.c.bf16 %v1421_v25, %v1420_v24  ;;  %v1426_v40 = vmul.f32 %v2801_v27, %v2355_v15  ;;  %v2387_v15 = vunpack.c.l.bf16 %v2480_v30 }
 0x211   :  { %v1112_v33 = vpop.f32.mrf.mxu1 }
 0x212   :  { %2875 = vmatprep.mubr.bf16.mxu0 %v1474_v29  ;;  %v1424_v50 = vmul.f32 %v2351_v35, %v1112_v33  ;;  %v2383_v35 = vunpack.c.l.bf16 %v2479_v28 }
 0x213   :  { %v2802_v36 = vpop.f32.mrf.mxu1  ;;  %2876 = vmatmul.mubr.bf16.gmra.mxu0 %v1475_v31 }
 0x214   :  { %v1427_v32 = vmul.f32 %v2802_v36, %v2356_v34  ;;  %v2388_v34 = vunpack.c.h.bf16 %v2480_v30  ;;  %v2488_v30 = vld [vmem:[#allocation5 + $0x1e8] sm:$0xff]  }
 0x215   :  { %v1115_v38 = vpop.f32.mrf.mxu1 }
 0x216   :  { %v1425_v39 = vmul.f32 %v2352_v37, %v1115_v38  ;;  %v1477_v47 = vpack.c.bf16 %v1427_v32, %v1426_v40  ;;  %v2384_v37 = vunpack.c.h.bf16 %v2479_v28  ;;  %v2487_v28 = vld [vmem:[#allocation5 + $0x1e0] sm:$0xff]  }
 0x217   :  { %v2805_v41 = vpop.f32.mrf.mxu1 }
 0x218   :  { %v1476_v44 = vpack.c.bf16 %v1425_v39, %v1424_v50  ;;  %v1430_v57 = vmul.f32 %v2805_v41, %v2363_v53  ;;  %v2395_v53 = vunpack.c.l.bf16 %v2482_v45 }
 0x219   :  { %v1128_v48 = vpop.f32.mrf.mxu1 }
 0x21a   :  { %2879 = vmatprep.mubr.bf16.mxu0 %v1476_v44  ;;  %v1428_v55 = vmul.f32 %v2359_v51, %v1128_v48  ;;  %v2391_v51 = vunpack.c.l.bf16 %v2481_v42 }
 0x21b   :  { %v2806_v4 = vpop.f32.mrf.mxu1  ;;  %2880 = vmatmul.mubr.bf16.gmra.mxu0 %v1477_v47 }
 0x21c   :  { %v1431_v54 = vmul.f32 %v2806_v4, %v2364_v49  ;;  %v2396_v49 = vunpack.c.h.bf16 %v2482_v45  ;;  %v2490_v45 = vld [vmem:[#allocation5 + $0x1f8] sm:$0xff]  }
 0x21d   :  { %v1131_v23 = vpop.f32.mrf.mxu1 }
 0x21e   :  { %v1429_v56 = vmul.f32 %v2360_v52, %v1131_v23  ;;  %v1479_v63 = vpack.c.bf16 %v1431_v54, %v1430_v57  ;;  %v2392_v52 = vunpack.c.h.bf16 %v2481_v42  ;;  %v2489_v42 = vld [vmem:[#allocation5 + $0x1f0] sm:$0xff]  }
 0x21f   :  { %v2809_v58 = vpop.f32.mrf.mxu1 }
 0x220   :  { %v1478_v60 = vpack.c.bf16 %v1429_v56, %v1428_v55  ;;  %v1434_v10 = vmul.f32 %v2809_v58, %v2371_v46  ;;  %v2403_v46 = vunpack.c.l.bf16 %v2484_v62 }
 0x221   :  { %v1144_v0 = vpop.f32.mrf.mxu1 }
 0x222   :  { %2883 = vmatprep.mubr.bf16.mxu0 %v1478_v60  ;;  %v1432_v8 = vmul.f32 %v2367_v2, %v1144_v0  ;;  %v2399_v2 = vunpack.c.l.bf16 %v2483_v59 }
 0x223   :  { %v2810_v5 = vpop.f32.mrf.mxu1  ;;  %2884 = vmatmul.mubr.bf16.gmra.mxu0 %v1479_v63 }
 0x224   :  { %v1435_v6 = vmul.f32 %v2810_v5, %v2372_v1  ;;  %v2404_v1 = vunpack.c.h.bf16 %v2484_v62 }
 0x225   :  { %v1147_v7 = vpop.f32.mrf.mxu1 }
 0x226   :  { %v1433_v9 = vmul.f32 %v2368_v3, %v1147_v7  ;;  %v1481_v16 = vpack.c.bf16 %v1435_v6, %v1434_v10  ;;  %v2400_v3 = vunpack.c.h.bf16 %v2483_v59 }
 0x227   :  { %v2813_v11 = vpop.f32.mrf.mxu1 }
 0x228   :  { %v1480_v13 = vpack.c.bf16 %v1433_v9, %v1432_v8  ;;  %v1438_v26 = vmul.f32 %v2813_v11, %v2379_v21  ;;  %v2411_v21 = vunpack.c.l.bf16 %v2486_v14 }
 0x229   :  { %v1160_v17 = vpop.f32.mrf.mxu1 }
 0x22a   :  { %2887 = vmatprep.mubr.bf16.mxu0 %v1480_v13  ;;  %v1436_v24 = vmul.f32 %v2375_v19, %v1160_v17  ;;  %v2407_v19 = vunpack.c.l.bf16 %v2485_v12 }
 0x22b   :  { %v2814_v43 = vpop.f32.mrf.mxu1  ;;  %2888 = vmatmul.mubr.bf16.gmra.mxu0 %v1481_v16 }
 0x22c   :  { %v1439_v61 = vmul.f32 %v2814_v43, %v2380_v18  ;;  %v2412_v18 = vunpack.c.h.bf16 %v2486_v14 }
 0x22d   :  { %v1163_v22 = vpop.f32.mrf.mxu1 }
 0x22e   :  { %v1437_v25 = vmul.f32 %v2376_v20, %v1163_v22  ;;  %v1483_v31 = vpack.c.bf16 %v1439_v61, %v1438_v26  ;;  %v2408_v20 = vunpack.c.h.bf16 %v2485_v12 }
 0x22f   :  { %v2817_v27 = vpop.f32.mrf.mxu1 }
 0x230   :  { %v1482_v29 = vpack.c.bf16 %v1437_v25, %v1436_v24  ;;  %v1442_v40 = vmul.f32 %v2817_v27, %v2387_v15  ;;  %v2419_v15 = vunpack.c.l.bf16 %v2488_v30 }
 0x231   :  { %v1176_v33 = vpop.f32.mrf.mxu1 }
 0x232   :  { %2891 = vmatprep.mubr.bf16.mxu0 %v1482_v29  ;;  %v1440_v50 = vmul.f32 %v2383_v35, %v1176_v33  ;;  %v2415_v35 = vunpack.c.l.bf16 %v2487_v28 }
 0x233   :  { %v2818_v36 = vpop.f32.mrf.mxu1  ;;  %2892 = vmatmul.mubr.bf16.gmra.mxu0 %v1483_v31 }
 0x234   :  { %v1443_v32 = vmul.f32 %v2818_v36, %v2388_v34  ;;  %v2420_v34 = vunpack.c.h.bf16 %v2488_v30 }
 0x235   :  { %v1179_v38 = vpop.f32.mrf.mxu1 }
 0x236   :  { %v1441_v39 = vmul.f32 %v2384_v37, %v1179_v38  ;;  %v1485_v47 = vpack.c.bf16 %v1443_v32, %v1442_v40  ;;  %v2416_v37 = vunpack.c.h.bf16 %v2487_v28 }
 0x237   :  { %v2821_v41 = vpop.f32.mrf.mxu1 }
 0x238   :  { %v1484_v44 = vpack.c.bf16 %v1441_v39, %v1440_v50  ;;  %v1446_v57 = vmul.f32 %v2821_v41, %v2395_v53  ;;  %v2427_v53 = vunpack.c.l.bf16 %v2490_v45 }
 0x239   :  { %v1192_v48 = vpop.f32.mrf.mxu1 }
 0x23a   :  { %2895 = vmatprep.mubr.bf16.mxu0 %v1484_v44  ;;  %v1444_v55 = vmul.f32 %v2391_v51, %v1192_v48  ;;  %v2423_v51 = vunpack.c.l.bf16 %v2489_v42 }
 0x23b   :  { %v2822_v4 = vpop.f32.mrf.mxu1  ;;  %2896 = vmatmul.mubr.bf16.gmra.mxu0 %v1485_v47 }
 0x23c   :  { %v1447_v54 = vmul.f32 %v2822_v4, %v2396_v49  ;;  %v2428_v49 = vunpack.c.h.bf16 %v2490_v45 }
 0x23d   :  { %v1195_v23 = vpop.f32.mrf.mxu1 }
 0x23e   :  { %v1445_v56 = vmul.f32 %v2392_v52, %v1195_v23  ;;  %v1487_v63 = vpack.c.bf16 %v1447_v54, %v1446_v57  ;;  %v2424_v52 = vunpack.c.h.bf16 %v2489_v42 }
 0x23f   :  { %v2825_v58 = vpop.f32.mrf.mxu1 }
 0x240   :  { %v1486_v60 = vpack.c.bf16 %v1445_v56, %v1444_v55  ;;  %v1450_v10 = vmul.f32 %v2825_v58, %v2403_v46 }
 0x241   :  { %v1208_v0 = vpop.f32.mrf.mxu1 }
 0x242   :  { %2899 = vmatprep.mubr.bf16.mxu0 %v1486_v60  ;;  %v1448_v8 = vmul.f32 %v2399_v2, %v1208_v0  ;;  %v3005_v60 = vld [vmem:[#allocation8 + $0x4] ss:$16 sps:$4 sm:$0xff]  }
 0x243   :  { %v2826_v5 = vpop.f32.mrf.mxu1  ;;  %2900 = vmatmul.mubr.bf16.gmra.mxu0 %v1487_v63  ;;  %1992 = vmatprep.mubr.bf16.mxu1 %v3005_v60 }
 0x244   :  { %v1451_v6 = vmul.f32 %v2826_v5, %v2404_v1 }
 0x245   :  { %v1211_v7 = vpop.f32.mrf.mxu1 }
 0x246   :  { %v1449_v9 = vmul.f32 %v2400_v3, %v1211_v7  ;;  %v1489_v16 = vpack.c.bf16 %v1451_v6, %v1450_v10 }
 0x247   :  { %v2829_v11 = vpop.f32.mrf.mxu1 }
 0x248   :  { %v1488_v13 = vpack.c.bf16 %v1449_v9, %v1448_v8  ;;  %v1454_v26 = vmul.f32 %v2829_v11, %v2411_v21 }
 0x249   :  { %v1224_v17 = vpop.f32.mrf.mxu1 }
 0x24a   :  { %2903 = vmatprep.mubr.bf16.mxu0 %v1488_v13  ;;  %v1452_v24 = vmul.f32 %v2407_v19, %v1224_v17 }
 0x24b   :  { %v2830_v43 = vpop.f32.mrf.mxu1  ;;  %2904 = vmatmul.mubr.bf16.gmra.mxu0 %v1489_v16 }
 0x24c   :  { %v1455_v61 = vmul.f32 %v2830_v43, %v2412_v18 }
 0x24d   :  { %v1227_v22 = vpop.f32.mrf.mxu1 }
 0x24e   :  { %v1453_v25 = vmul.f32 %v2408_v20, %v1227_v22  ;;  %v1491_v31 = vpack.c.bf16 %v1455_v61, %v1454_v26 }
 0x24f   :  { %v2833_v27 = vpop.f32.mrf.mxu1 }
 0x250   :  { %v1490_v29 = vpack.c.bf16 %v1453_v25, %v1452_v24  ;;  %v1458_v40 = vmul.f32 %v2833_v27, %v2419_v15 }
 0x251   :  { %v1240_v33 = vpop.f32.mrf.mxu1 }
 0x252   :  { %2907 = vmatprep.mubr.bf16.mxu0 %v1490_v29  ;;  %v1456_v50 = vmul.f32 %v2415_v35, %v1240_v33 }
 0x253   :  { %v2834_v36 = vpop.f32.mrf.mxu1  ;;  %2908 = vmatmul.mubr.bf16.gmra.mxu0 %v1491_v31 }
 0x254   :  { %v1459_v32 = vmul.f32 %v2834_v36, %v2420_v34 }
 0x255   :  { %v1243_v38 = vpop.f32.mrf.mxu1 }
 0x256   :  { %v1457_v39 = vmul.f32 %v2416_v37, %v1243_v38  ;;  %v1493_v47 = vpack.c.bf16 %v1459_v32, %v1458_v40 }
 0x257   :  { %v2837_v41 = vpop.f32.mrf.mxu1 }
 0x258   :  { %v1492_v44 = vpack.c.bf16 %v1457_v39, %v1456_v50  ;;  %v1462_v57 = vmul.f32 %v2837_v41, %v2427_v53 }
 0x259   :  { %v1256_v48 = vpop.f32.mrf.mxu1 }
 0x25a   :  { %2911 = vmatprep.mubr.bf16.mxu0 %v1492_v44  ;;  %v1460_v55 = vmul.f32 %v2423_v51, %v1256_v48 }
 0x25b   :  { %v2838_v4 = vpop.f32.mrf.mxu1  ;;  %2912 = vmatmul.mubr.bf16.gmra.mxu0 %v1493_v47 }
 0x25c   :  { %v1463_v54 = vmul.f32 %v2838_v4, %v2428_v49 }
 0x25d   :  { %v1259_v23 = vpop.f32.mrf.mxu1 }
 0x25e   :  { %v1461_v56 = vmul.f32 %v2424_v52, %v1259_v23  ;;  %v1495_v59 = vpack.c.bf16 %v1463_v54, %v1462_v57 }
 0x260   :  { %v1494_v58 = vpack.c.bf16 %v1461_v56, %v1460_v55 }
 0x262   :  { %2915 = vmatprep.mubr.bf16.mxu0 %v1494_v58 }
 0x263   :  { %2916 = vmatmul.mubr.bf16.gmra.mxu0 %v1495_v59 }
 0x2ab   :  { %v3201_v62 = vpop.f32.mrf.mxu0 }
 0x2ad   :  { %v3203_v63 = vpop.f32.mrf.mxu0 }
 0x2af   :  { %v3205_v0 = vpop.f32.mrf.mxu0 }
 0x2b0   :  { %v1851_v1 = vpack.c.bf16 %v3205_v0, %v3201_v62 }
 0x2b1   :  { %v3209_v2 = vpop.f32.mrf.mxu0 }
 0x2b2   :  { %v1850_v3 = vpack.c.bf16 %v3209_v2, %v3203_v63 }
 0x2b3   :  { %v2861_v46 = vpop.f32.mrf.mxu0 }
 0x2b5   :  { %v3213_v5 = vpop.f32.mrf.mxu0 }
 0x2b7   :  { %v2862_v6 = vpop.f32.mrf.mxu0 }
 0x2b8   :  { %v1853_v7 = vpack.c.bf16 %v2862_v6, %v2861_v46  ;;  %v3003_v6 = vld [vmem:[#allocation8] ss:$16 sps:$4 sm:$0xff]  }
 0x2b9   :  { %v3215_v8 = vpop.f32.mrf.mxu0 }
 0x2ba   :  { %v1852_v9 = vpack.c.bf16 %v3215_v8, %v3213_v5 }
 0x2bb   :  { %v2865_v10 = vpop.f32.mrf.mxu0 }
 0x2bd   :  { %v1627_v11 = vpop.f32.mrf.mxu0 }
 0x2bf   :  { %v2866_v12 = vpop.f32.mrf.mxu0 }
 0x2c0   :  { %v1855_v41 = vpack.c.bf16 %v2866_v12, %v2865_v10  ;;  %v3008_v12 = vld [vmem:[#allocation8 + $0x20] ss:$16 sps:$4 sm:$0xff]  }
 0x2c1   :  { %v1630_v13 = vpop.f32.mrf.mxu0 }
 0x2c2   :  { %v1854_v48 = vpack.c.bf16 %v1630_v13, %v1627_v11 }
 0x2c3   :  { %v2869_v14 = vpop.f32.mrf.mxu0 }
 0x2c5   :  { %v1643_v16 = vpop.f32.mrf.mxu0 }
 0x2c7   :  { %v2870_v17 = vpop.f32.mrf.mxu0 }
 0x2c8   :  { %v1857_v35 = vpack.c.bf16 %v2870_v17, %v2869_v14  ;;  %v3009_v14 = vld [vmem:[#allocation8 + $0x44] ss:$16 sps:$4 sm:$0xff]  }
 0x2c9   :  { %v1646_v18 = vpop.f32.mrf.mxu0 }
 0x2ca   :  { %v1856_v32 = vpack.c.bf16 %v1646_v18, %v1643_v16  ;;  %v3014_v18 = vld [vmem:[#allocation8 + $0xc] ss:$16 sps:$4 sm:$0xff]  }
 0x2cb   :  { %v2873_v19 = vpop.f32.mrf.mxu0 }
 0x2cd   :  { %v1659_v20 = vpop.f32.mrf.mxu0 }
 0x2cf   :  { %v2874_v21 = vpop.f32.mrf.mxu0 }
 0x2d0   :  { %v1859_v57 = vpack.c.bf16 %v2874_v21, %v2873_v19 }
 0x2d1   :  { %v1662_v43 = vpop.f32.mrf.mxu0 }
 0x2d2   :  { %v1858_v60 = vpack.c.bf16 %v1662_v43, %v1659_v20 }
 0x2d3   :  { %v2877_v61 = vpop.f32.mrf.mxu0 }
 0x2d5   :  { %v1675_v22 = vpop.f32.mrf.mxu0 }
 0x2d7   :  { %v2878_v24 = vpop.f32.mrf.mxu0 }
 0x2d8   :  { %v1861_v51 = vpack.c.bf16 %v2878_v24, %v2877_v61 }
 0x2d9   :  { %v1678_v25 = vpop.f32.mrf.mxu0 }
 0x2da   :  { %v1860_v54 = vpack.c.bf16 %v1678_v25, %v1675_v22 }
 0x2db   :  { %v2881_v26 = vpop.f32.mrf.mxu0 }
 0x2dd   :  { %v1691_v27 = vpop.f32.mrf.mxu0 }
 0x2df   :  { %v2882_v28 = vpop.f32.mrf.mxu0 }
 0x2e0   :  { %v1863_v50 = vpack.c.bf16 %v2882_v28, %v2881_v26 }
 0x2e1   :  { %v1694_v29 = vpop.f32.mrf.mxu0 }
 0x2e2   :  { %v1862_v44 = vpack.c.bf16 %v1694_v29, %v1691_v27 }
 0x2e3   :  { %v2885_v30 = vpop.f32.mrf.mxu0 }
 0x2e5   :  { %v1707_v31 = vpop.f32.mrf.mxu0 }
 0x2e7   :  { %v2886_v33 = vpop.f32.mrf.mxu0 }
 0x2e8   :  { %v1865_v34 = vpack.c.bf16 %v2886_v33, %v2885_v30 }
 0x2e9   :  { %v1710_v37 = vpop.f32.mrf.mxu0 }
 0x2ea   :  { %v1864_v15 = vpack.c.bf16 %v1710_v37, %v1707_v31  ;;  %2611 = vmatprep.subr.bf16.mxu1 %v1865_v34 }
 0x2eb   :  { %v3219_v36 = vpop.f32.mrf.mxu0  ;;  %2612 = vmatpush3.bf16.msra.mxu1 %v1857_v35 }
 0x2ec   :  { %2613 = vmatprep.subr.bf16.mxu1 %v1864_v15  ;;  %v3012_v15 = vld [vmem:[#allocation8 + $0x8] ss:$16 sps:$4 sm:$0xff]  }
 0x2ed   :  { %v3221_v38 = vpop.f32.mrf.mxu0 }
 0x2ef   :  { %v3223_v39 = vpop.f32.mrf.mxu0  ;;  %2614 = vmatpush3.bf16.msra.mxu1 %v1856_v32  ;;  %v3015_v32 = vld [vmem:[#allocation8 + $0x2c] ss:$16 sps:$4 sm:$0xff]  }
 0x2f0   :  { %v1867_v40 = vpack.c.bf16 %v3223_v39, %v3219_v36  ;;  %2615 = vmatprep.subr.bf16.mxu1 %v1863_v50  ;;  %v3017_v50 = vld [vmem:[#allocation8 + $0x28] ss:$16 sps:$4 sm:$0xff]  }
 0x2f1   :  { %v3227_v42 = vpop.f32.mrf.mxu0 }
 0x2f2   :  { %v1866_v45 = vpack.c.bf16 %v3227_v42, %v3221_v38 }
 0x2f3   :  { %v3231_v47 = vpop.f32.mrf.mxu0  ;;  %2616 = vmatpush3.bf16.msra.mxu1 %v1855_v41  ;;  %v3018_v41 = vld [vmem:[#allocation8 + $0x4c] ss:$16 sps:$4 sm:$0xff]  }
 0x2f4   :  { %2617 = vmatprep.subr.bf16.mxu1 %v1862_v44  ;;  %v3020_v44 = vld [vmem:[#allocation8 + $0x48] ss:$16 sps:$4 sm:$0xff]  }
 0x2f5   :  { %v3233_v49 = vpop.f32.mrf.mxu0 }
 0x2f7   :  { %v3235_v52 = vpop.f32.mrf.mxu0  ;;  %2618 = vmatpush3.bf16.msra.mxu1 %v1854_v48 }
 0x2f8   :  { %v1869_v53 = vpack.c.bf16 %v3235_v52, %v3231_v47  ;;  %2619 = vmatprep.subr.bf16.mxu1 %v1861_v51 }
 0x2f9   :  { %v3239_v4 = vpop.f32.mrf.mxu0 }
 0x2fa   :  { %v1868_v23 = vpack.c.bf16 %v3239_v4, %v3233_v49 }
 0x2fb   :  { %v2897_v55 = vpop.f32.mrf.mxu0  ;;  %2620 = vmatpush3.bf16.msra.mxu1 %v1853_v7  ;;  %v3006_v7 = vld [vmem:[#allocation8 + $0x24] ss:$16 sps:$4 sm:$0xff]  }
 0x2fc   :  { %2621 = vmatprep.subr.bf16.mxu1 %v1860_v54 }
 0x2fd   :  { %v1755_v56 = vpop.f32.mrf.mxu0 }
 0x2ff   :  { %v2898_v58 = vpop.f32.mrf.mxu0  ;;  %2622 = vmatpush3.bf16.msra.mxu1 %v1852_v9 }
 0x300   :  { %2623 = vmatprep.subr.bf16.mxu1 %v1859_v57  ;;  %v1871_v29 = vpack.c.bf16 %v2898_v58, %v2897_v55 }
 0x301   :  { %v1758_v59 = vpop.f32.mrf.mxu0 }
 0x302   :  { %v1870_v31 = vpack.c.bf16 %v1758_v59, %v1755_v56 }
 0x303   :  { %v2901_v46 = vpop.f32.mrf.mxu0  ;;  %2624 = vmatpush3.bf16.msra.mxu1 %v1851_v1  ;;  %v3011_v1 = vld [vmem:[#allocation8 + $0x40] ss:$16 sps:$4 sm:$0xff]  }
 0x304   :  { %2625 = vmatprep.subr.bf16.mxu1 %v1858_v60 }
 0x305   :  { %v1771_v5 = vpop.f32.mrf.mxu0 }
 0x307   :  { %v2902_v8 = vpop.f32.mrf.mxu0  ;;  %2626 = vmatpush3.bf16.msra.mxu1 %v1850_v3 }
 0x308   :  { %v1873_v24 = vpack.c.bf16 %v2902_v8, %v2901_v46 }
 0x309   :  { %v1774_v10 = vpop.f32.mrf.mxu0 }
 0x30a   :  { %1993 = vmatmul.mubr.bf16.vlgmr.msra.gmra.mxu1 %v3003_v6  ;;  %v1872_v27 = vpack.c.bf16 %v1774_v10, %v1771_v5 }
 0x30b   :  { %v2905_v9 = vpop.f32.mrf.mxu0  ;;  %2000 = vmatprep.mubr.bf16.mxu1 %v3006_v7 }
 0x30d   :  { %v1787_v11 = vpop.f32.mrf.mxu0 }
 0x30f   :  { %v2906_v13 = vpop.f32.mrf.mxu0 }
 0x310   :  { %v1875_v35 = vpack.c.bf16 %v2906_v13, %v2905_v9 }
 0x311   :  { %v1790_v16 = vpop.f32.mrf.mxu0 }
 0x312   :  { %2001 = vmatmul.mubr.bf16.gmra.mxu1 %v3008_v12  ;;  %v1874_v37 = vpack.c.bf16 %v1790_v16, %v1787_v11 }
 0x313   :  { %v2909_v62 = vpop.f32.mrf.mxu0  ;;  %2008 = vmatprep.mubr.bf16.mxu1 %v3009_v14 }
 0x315   :  { %v1803_v0 = vpop.f32.mrf.mxu0 }
 0x317   :  { %v2910_v17 = vpop.f32.mrf.mxu0 }
 0x318   :  { %v1877_v33 = vpack.c.bf16 %v2910_v17, %v2909_v62 }
 0x319   :  { %v1806_v19 = vpop.f32.mrf.mxu0 }
 0x31a   :  { %2009 = vmatmul.mubr.bf16.gmra.mxu1 %v3011_v1  ;;  %v1876_v34 = vpack.c.bf16 %v1806_v19, %v1803_v0 }
 0x31b   :  { %v2913_v63 = vpop.f32.mrf.mxu0  ;;  %2049 = vmatprep.mubr.bf16.mxu1 %v3014_v18 }
 0x31d   :  { %v1819_v2 = vpop.f32.mrf.mxu0 }
 0x31f   :  { %v2914_v3 = vpop.f32.mrf.mxu0 }
 0x320   :  { %v1879_v28 = vpack.c.bf16 %v2914_v3, %v2913_v63 }
 0x321   :  { %v1822_v20 = vpop.f32.mrf.mxu0 }
 0x322   :  { %v1878_v30 = vpack.c.bf16 %v1822_v20, %v1819_v2 }
 0x323   :  { %v2917_v21 = vpop.f32.mrf.mxu0 }
 0x325   :  { %v1835_v43 = vpop.f32.mrf.mxu0 }
 0x327   :  { %v2918_v61 = vpop.f32.mrf.mxu0 }
 0x328   :  { %v1881_v22 = vpack.c.bf16 %v2918_v61, %v2917_v21 }
 0x329   :  { %v1838_v25 = vpop.f32.mrf.mxu0 }
 0x32a   :  { %2645 = vmatprep.subr.bf16.mxu1 %v1881_v22  ;;  %v1880_v26 = vpack.c.bf16 %v1838_v25, %v1835_v43 }
 0x32b   :  { %2646 = vmatpush3.bf16.msra.mxu1 %v1873_v24 }
 0x32c   :  { %2647 = vmatprep.subr.bf16.mxu1 %v1880_v26 }
 0x32f   :  { %2648 = vmatpush3.bf16.msra.mxu1 %v1872_v27 }
 0x330   :  { %2649 = vmatprep.subr.bf16.mxu1 %v1879_v28 }
 0x333   :  { %2650 = vmatpush3.bf16.msra.mxu1 %v1871_v29 }
 0x334   :  { %2651 = vmatprep.subr.bf16.mxu1 %v1878_v30 }
 0x337   :  { %2652 = vmatpush3.bf16.msra.mxu1 %v1870_v31 }
 0x338   :  { %2653 = vmatprep.subr.bf16.mxu1 %v1877_v33 }
 0x33b   :  { %2654 = vmatpush3.bf16.msra.mxu1 %v1869_v53 }
 0x33c   :  { %2655 = vmatprep.subr.bf16.mxu1 %v1876_v34 }
 0x33f   :  { %2656 = vmatpush3.bf16.msra.mxu1 %v1868_v23 }
 0x340   :  { %2657 = vmatprep.subr.bf16.mxu1 %v1875_v35 }
 0x343   :  { %2658 = vmatpush3.bf16.msra.mxu1 %v1867_v40 }
 0x344   :  { %2659 = vmatprep.subr.bf16.mxu1 %v1874_v37 }
 0x347   :  { %2660 = vmatpush3.bf16.msra.mxu1 %v1866_v45 }
 0x34a   :  { %2050 = vmatmul.mubr.bf16.vlgmr.msra.gmra.mxu1 %v3012_v15 }
 0x34b   :  { %2057 = vmatprep.mubr.bf16.mxu1 %v3015_v32 }
 0x352   :  { %2058 = vmatmul.mubr.bf16.gmra.mxu1 %v3017_v50 }
 0x353   :  { %2065 = vmatprep.mubr.bf16.mxu1 %v3018_v41 }
 0x35a   :  { %2066 = vmatmul.mubr.bf16.gmra.mxu1 %v3020_v44 }
 0x3ca   :  { %v2627_v47 = vpop.f32.mrf.mxu1 }
 0x3cc   :  { %v2628_v48 = vpop.f32.mrf.mxu1 }
 0x3cd   :  { %v2629_v23 = vadd.f32 %v2628_v48, %v2627_v47 }
 0x3ce   :  { %v2630_v49 = vpop.f32.mrf.mxu1 }
 0x3d0   :  { %v2631_v36 = vpop.f32.mrf.mxu1 }
 0x3d1   :  { %v2632_v59 = vadd.f32 %v2631_v36, %v2630_v49 }
 0x3d2   :  { %v2633_v39 = vpop.f32.mrf.mxu1 }
 0x3d4   :  { %v2634_v40 = vpop.f32.mrf.mxu1 }
 0x3d5   :  { %v2635_v8 = vadd.f32 %v2634_v40, %v2633_v39 }
 0x3d6   :  { %v2636_v51 = vpop.f32.mrf.mxu1 }
 0x3d8   :  { %v2637_v52 = vpop.f32.mrf.mxu1 }
 0x3d9   :  { %v2638_v12 = vadd.f32 %v2637_v52, %v2636_v51 }
 0x3da   :  { %v2639_v53 = vpop.f32.mrf.mxu1 }
 0x3dc   :  { %v2640_v38 = vpop.f32.mrf.mxu1 }
 0x3dd   :  { %v2641_v0 = vadd.f32 %v2640_v38, %v2639_v53 }
 0x3de   :  { %v2642_v42 = vpop.f32.mrf.mxu1 }
 0x3e0   :  { %v2643_v45 = vpop.f32.mrf.mxu1 }
 0x3e1   :  { %v2644_v63 = vadd.f32 %v2643_v45, %v2642_v42 }
 0x40a   :  { %v2661_v4 = vpop.f32.mrf.mxu1 }
 0x40c   :  { %v2662_v54 = vpop.f32.mrf.mxu1 }
 0x40d   :  { %v2663_v55 = vadd.f32 %v2662_v54, %v2661_v4 }
 0x40e   :  { %v2664_v56 = vpop.f32.mrf.mxu1 }
 0x40f   :  { %v2052_v57 = vadd.f32 %v2663_v55, %v2629_v23 }
 0x410   :  { %v2665_v58 = vpop.f32.mrf.mxu1 }
 0x411   :  { %v2666_v60 = vadd.f32 %v2665_v58, %v2664_v56  ;;  %2080 = vst [vmem:[#allocation10] sm:$0xff] %v2052_v57 }
 0x412   :  { %v2667_v46 = vpop.f32.mrf.mxu1 }
 0x413   :  { %v2055_v5 = vadd.f32 %v2666_v60, %v2632_v59 }
 0x414   :  { %v2668_v6 = vpop.f32.mrf.mxu1 }
 0x415   :  { %v2669_v7 = vadd.f32 %v2668_v6, %v2667_v46  ;;  %2081 = vst [vmem:[#allocation10 + $0x8] sm:$0xff] %v2055_v5 }
 0x416   :  { %v2670_v10 = vpop.f32.mrf.mxu1 }
 0x417   :  { %v2060_v9 = vadd.f32 %v2669_v7, %v2635_v8 }
 0x418   :  { %v2671_v11 = vpop.f32.mrf.mxu1 }
 0x419   :  { %v2672_v13 = vadd.f32 %v2671_v11, %v2670_v10  ;;  %2082 = vst [vmem:[#allocation10 + $0x10] sm:$0xff] %v2060_v9 }
 0x41a   :  { %v2673_v14 = vpop.f32.mrf.mxu1 }
 0x41b   :  { %v2063_v16 = vadd.f32 %v2672_v13, %v2638_v12 }
 0x41c   :  { %v2674_v62 = vpop.f32.mrf.mxu1 }
 0x41d   :  { %v2675_v1 = vadd.f32 %v2674_v62, %v2673_v14  ;;  %2083 = vst [vmem:[#allocation10 + $0x18] sm:$0xff] %v2063_v16 }
 0x41e   :  { %v2676_v17 = vpop.f32.mrf.mxu1 }
 0x41f   :  { %v2068_v18 = vadd.f32 %v2675_v1, %v2641_v0 }
 0x420   :  { %v2677_v19 = vpop.f32.mrf.mxu1 }
 0x421   :  { %v2678_v2 = vadd.f32 %v2677_v19, %v2676_v17  ;;  %2084 = vst [vmem:[#allocation10 + $0x20] sm:$0xff] %v2068_v18 }
 0x423   :  { %v2071_v3 = vadd.f32 %v2678_v2, %v2644_v63 }
 0x425   :  { %2085 = vst [vmem:[#allocation10 + $0x28] sm:$0xff] %v2071_v3 }
 0x426   :  { %3112 = shalt.err (!%p3109_p10)
}
 0x427   :  { %s3138_s12 = smov 128   ;;  %s3139_s13 = smov 8  }
 0x428   :  { %2097 = dma.vmem_to_hbm [thread:$0]  %s2092_s3, 768, %s3268_s4, [#allocation4], %s3138_s12, %s3138_s12, %s3139_s13  }
 0x429   :  { %3127 = dma.done.wait [#allocation4], 768  }
 0x42a   :  { %3128 = vsyncadd [#allocation4], 4294966528 }
 0x42b   :  { %2101 = vsyncpa [#allocation3], 1 }
 0x42c   :  { %2102 = vsyncpa [#allocation6], 1 }
 0x42d   :  { %2103 = vsyncpa [#allocation9], 1 }
 0x42e   :  { %2104 = vsyncpa [#allocation4], 1 }

</bundles_post_ra>
